<compile_context>
chip_gen: v7x
topology: tpu7x:2x2x1
jax: 0.10.0
libtpu: 0.0.40
codegen_flags: <defaults>
</compile_context>

<pallas_src>
import math
import functools

import jax
import jax.numpy as jnp
from jax.experimental import pallas as pl
from jax.experimental.pallas import tpu as pltpu


# ---------------------------------------------------------------------------
# Hardware introspection (generation-aware tiling / VMEM budget / bf16 exp)
# ---------------------------------------------------------------------------
def _tpu_generation():
    try:
        kind = jax.devices()[0].device_kind.lower()
    except Exception:
        return 6
    for marker, gen in (("v7", 7), ("7x", 7), ("v6", 6), ("v5", 5), ("v4", 4), ("v3", 3)):
        if marker in kind:
            return gen
    return 6


def _vmem_limit_bytes(gen):
    cap = None
    try:
        cap = int(pltpu.get_tpu_info().vmem_capacity_bytes)
    except Exception:
        cap = None
    if not cap or cap <= 0:
        cap = (64 if gen >= 7 else 128) * 1024 * 1024
    # ~55% of physical VMEM, capped; leaves headroom for compiler temporaries.
    return min(int(0.55 * cap), 100 * 1024 * 1024)


def _pick_tile(size, target, mult=128):
    """Largest divisor of `size` <= target, preferring multiples of `mult`,
    then 128, then 8.  Falls back to a single full tile."""
    if size <= target:
        return size
    for step in (mult, 128, 8):
        t = (target // step) * step
        while t >= step:
            if size % t == 0:
                return t
            t -= step
    return size


# ---------------------------------------------------------------------------
# Fused kernel: GroupNorm (two-pass variance) + QKV projection, one batch/call
# ---------------------------------------------------------------------------
def _gn_qkv_fused_kernel(num_heads, head_dim, norm_count, eps,
                         x_ref, gamma_ref, beta_ref, gmap_ref, gmapT_ref,
                         w_ref, b_ref, q_ref, k_ref, v_ref):
    x = x_ref[0].astype(jnp.float32)                        # (S, C)
    # Two-pass GroupNorm: mean first, then variance of centered data (avoids
    # the E[x^2] - E[x]^2 cancellation).  Group aggregation via tiny (C, G)
    # one-hot matmuls.
    col_sum = jnp.sum(x, axis=0, keepdims=True)             # (1, C)
    g_sum = jnp.dot(col_sum, gmap_ref[...], preferred_element_type=jnp.float32)
    mean = jnp.dot(g_sum, gmapT_ref[...], preferred_element_type=jnp.float32) / norm_count
    xc = x - mean
    col_sq = jnp.sum(xc * xc, axis=0, keepdims=True)
    g_sq = jnp.dot(col_sq, gmap_ref[...], preferred_element_type=jnp.float32)
    var = jnp.dot(g_sq, gmapT_ref[...], preferred_element_type=jnp.float32) / norm_count
    scale = gamma_ref[...] * jax.lax.rsqrt(var + eps)       # (1, C)
    h = (xc * scale + beta_ref[...]).astype(jnp.bfloat16)   # (S, C)

    qkv = jnp.dot(h, w_ref[...], preferred_element_type=jnp.float32) + b_ref[...]
    qkv = qkv.astype(q_ref.dtype)                           # (S, 3*DI) bf16
    di = num_heads * head_dim
    # Per-head split happens once per batch (not in the attention hot loop).
    for hh in range(num_heads):
        lo = hh * head_dim
        q_ref[0, hh] = qkv[:, lo:lo + head_dim]
        k_ref[0, hh] = qkv[:, di + lo:di + lo + head_dim]
        v_ref[0, hh] = qkv[:, 2 * di + lo:2 * di + lo + head_dim]


# ---------------------------------------------------------------------------
# Fallback kernel 1: streaming GroupNorm statistics -> per-(b, c) scale/shift
# ---------------------------------------------------------------------------
def _gn_stats_kernel(norm_count, eps,
                     x_ref, gamma_ref, beta_ref, gmap_ref, gmapT_ref,
                     scale_ref, shift_ref, sum_sc, sq_sc):
    si = pl.program_id(1)

    @pl.when(si == 0)
    def _():
        sum_sc[...] = jnp.zeros_like(sum_sc)
        sq_sc[...] = jnp.zeros_like(sq_sc)

    x = x_ref[0].astype(jnp.float32)                        # (ts, C)
    sum_sc[...] += jnp.sum(x, axis=0, keepdims=True)
    sq_sc[...] += jnp.sum(x * x, axis=0, keepdims=True)

    @pl.when(si == pl.num_programs(1) - 1)
    def _():
        g_sum = jnp.dot(sum_sc[...], gmap_ref[...], preferred_element_type=jnp.float32)
        g_sq = jnp.dot(sq_sc[...], gmap_ref[...], preferred_element_type=jnp.float32)
        mean = jnp.dot(g_sum, gmapT_ref[...], preferred_element_type=jnp.float32) / norm_count
        mean_sq = jnp.dot(g_sq, gmapT_ref[...], preferred_element_type=jnp.float32) / norm_count
        # Streaming path keeps the single-pass formula (clamped); the fused
        # path above is the numerically-preferred two-pass route.
        var = jnp.maximum(mean_sq - mean * mean, 0.0)
        scale = gamma_ref[...] * jax.lax.rsqrt(var + eps)
        shift = beta_ref[...] - mean * scale
        scale_ref[0] = scale.astype(scale_ref.dtype)
        shift_ref[0] = shift.astype(shift_ref.dtype)


# ---------------------------------------------------------------------------
# Fallback kernel 2: normalize + fused QKV projection (bf16 MXU operands)
# ---------------------------------------------------------------------------
def _qkv_split_kernel(num_heads, head_dim,
                      x_ref, scale_ref, shift_ref, w_ref, b_ref,
                      q_ref, k_ref, v_ref):
    x = x_ref[0].astype(jnp.float32)                        # (ts, C)
    h = (x * scale_ref[0] + shift_ref[0]).astype(jnp.bfloat16)
    qkv = jnp.dot(h, w_ref[...], preferred_element_type=jnp.float32) + b_ref[...]
    qkv = qkv.astype(q_ref.dtype)                           # (ts, 3*DI) bf16
    di = num_heads * head_dim
    for hh in range(num_heads):
        lo = hh * head_dim
        q_ref[0, hh] = qkv[:, lo:lo + head_dim]
        k_ref[0, hh] = qkv[:, di + lo:di + lo + head_dim]
        v_ref[0, hh] = qkv[:, 2 * di + lo:2 * di + lo + head_dim]


# ---------------------------------------------------------------------------
# Kernel 3: flash attention (online softmax over KV tiles) + out-proj + residual
# ---------------------------------------------------------------------------
def _flash_attn_kernel(num_heads, use_bf16_exp,
                       x_ref, q_ref, k_ref, v_ref, wo_ref, bo_ref,
                       out_ref, m_sc, l_sc, acc_sc):
    kj = pl.program_id(2)

    @pl.when(kj == 0)
    def _():
        m_sc[...] = jnp.full_like(m_sc, -jnp.inf)
        l_sc[...] = jnp.zeros_like(l_sc)
        acc_sc[...] = jnp.zeros_like(acc_sc)

    # Static unroll over heads; q/k/v are in (head, seq, dim) layout so every
    # per-head access is a free leading-axis view (no lane slices in the loop).
    for h in range(num_heads):
        q_h = q_ref[0, h]                                   # (tq, D) bf16, sm_scale pre-folded
        k_h = k_ref[0, h]                                   # (tk, D) bf16
        v_h = v_ref[0, h]                                   # (tk, D) bf16
        s = jax.lax.dot_general(q_h, k_h, (((1,), (1,)), ((), ())),
                                preferred_element_type=jnp.float32)   # (tq, tk)
        m_prev = m_sc[h]                                    # (tq, 1)
        m_new = jnp.maximum(m_prev, jnp.max(s, axis=-1, keepdims=True))
        alpha = jnp.exp(m_prev - m_new)
        if use_bf16_exp:
            # v6e/v7x: bf16 EUP ~2x f32 exp throughput; skipped on v5e.
            p = jnp.exp((s - m_new).astype(jnp.bfloat16))
            row_sum = jnp.sum(p.astype(jnp.float32), axis=-1, keepdims=True)
        else:
            p = jnp.exp(s - m_new)
            row_sum = jnp.sum(p, axis=-1, keepdims=True)
        l_sc[h] = alpha * l_sc[h] + row_sum
        pv = jnp.dot(p.astype(v_h.dtype), v_h, preferred_element_type=jnp.float32)
        acc_sc[h] = alpha * acc_sc[h] + pv
        m_sc[h] = m_new

    @pl.when(kj == pl.num_programs(2) - 1)
    def _():
        out = x_ref[0].astype(jnp.float32) + bo_ref[...]    # residual + out-proj bias
        for h in range(num_heads):
            inv_l = 1.0 / l_sc[h]                           # exact; once per q tile
            attn_h = (acc_sc[h] * inv_l).astype(jnp.bfloat16)
            out = out + jnp.dot(attn_h, wo_ref[h], preferred_element_type=jnp.float32)
        out_ref[0] = out.astype(out_ref.dtype)


# ---------------------------------------------------------------------------
# Host wrapper
# ---------------------------------------------------------------------------
def attention_forward(x, params, *, num_heads, head_dim, num_groups, eps=1e-6,
                      block_s=None, block_q=None, block_kv=None, fuse_gn_qkv=None):
    # TODO(synk): optional attn_mask argument of the PyTorch module is not
    # implemented (forward assumes attn_mask=None, as in the VAE decoder use).
    B, S, C = x.shape
    DI = num_heads * head_dim
    assert C % num_groups == 0
    cg = C // num_groups
    x_item = jnp.dtype(x.dtype).itemsize

    gen = _tpu_generation()
    vmem_limit = _vmem_limit_bytes(gen)
    budget = int(0.7 * vmem_limit)
    use_bf16_exp = gen >= 6            # v5e has no bf16 EUP: keep softmax math f32
    mxu_mult = 256 if gen >= 6 else 128

    # ---- parameter prep (layout only; MXU operands cast to bf16) ----
    sm_scale = 1.0 / math.sqrt(head_dim)
    gamma = params["gn_weight"].reshape(1, C).astype(jnp.float32)
    beta = params["gn_bias"].reshape(1, C).astype(jnp.float32)
    # sm_scale folded into the Q projection: no per-kv-step score scaling.
    wqkv = jnp.concatenate([params["wq"].T * sm_scale, params["wk"].T, params["wv"].T],
                           axis=1).astype(jnp.bfloat16)                 # (C, 3*DI)
    bqkv = jnp.concatenate([params["bq"] * sm_scale, params["bk"], params["bv"]],
                           axis=0).reshape(1, 3 * DI).astype(jnp.float32)
    wo = params["wo"].T.reshape(num_heads, head_dim, C).astype(jnp.bfloat16)  # (H, D, C)
    bo = params["bo"].reshape(1, C).astype(jnp.float32)

    group_ids = jnp.arange(C) // cg
    gmap = (group_ids[:, None] == jnp.arange(num_groups)[None, :]).astype(jnp.float32)
    gmapT = gmap.T
    norm_count = float(S * cg)

    qkv_shapes = tuple(jax.ShapeDtypeStruct((B, num_heads, S, head_dim), jnp.bfloat16)
                       for _ in range(3))

    # ------------------------------------------------------------------
    # Stage 1+2: GroupNorm + QKV projection
    # ------------------------------------------------------------------
    if fuse_gn_qkv is None:
        fused_bytes = (2 * S * C * 4 + 3 * 2 * S * DI * 2 + 2 * C * 3 * DI * 2
                       + 4 * S * C * 4 + 2 * S * 3 * DI * 4)
        fuse_gn_qkv = fused_bytes <= budget

    if fuse_gn_qkv:
        # NOTE(v7x, B=1): grid=(B,) places stage 1+2 on a single TensorCore when
        # B == 1; acceptable since stage 3 dominates.  Force fuse_gn_qkv=False to
        # use the sequence-tiled streaming path instead if needed.
        fused_kernel = functools.partial(_gn_qkv_fused_kernel, num_heads, head_dim,
                                         norm_count, eps)
        q, k, v = pl.pallas_call(
            fused_kernel,
            out_shape=qkv_shapes,
            grid_spec=pltpu.PrefetchScalarGridSpec(
                num_scalar_prefetch=0,
                grid=(B,),
                in_specs=[
                    pl.BlockSpec((1, S, C), lambda b: (b, 0, 0)),
                    pl.BlockSpec((1, C), lambda b: (0, 0)),
                    pl.BlockSpec((1, C), lambda b: (0, 0)),
                    pl.BlockSpec((C, num_groups), lambda b: (0, 0)),
                    pl.BlockSpec((num_groups, C), lambda b: (0, 0)),
                    pl.BlockSpec((C, 3 * DI), lambda b: (0, 0)),
                    pl.BlockSpec((1, 3 * DI), lambda b: (0, 0)),
                ],
                out_specs=tuple(
                    pl.BlockSpec((1, num_heads, S, head_dim), lambda b: (b, 0, 0, 0))
                    for _ in range(3)),
            ),
            compiler_params=pltpu.CompilerParams(
                dimension_semantics=("parallel",),
                vmem_limit_bytes=vmem_limit),
            cost_estimate=pl.CostEstimate(
                flops=int(2 * B * S * C * 3 * DI),
                transcendentals=0,
                bytes_accessed=int(B * S * C * x_item + 3 * B * S * DI * 2
                                   + C * 3 * DI * 2)),
        )(x, gamma, beta, gmap, gmapT, wqkv, bqkv)
    else:
        ts = block_s or _pick_tile(S, 1024, 128)
        if block_s is None:
            while ts > 128:
                est = (2 * ts * C * x_item + 3 * 2 * ts * DI * 2 + 2 * C * 3 * DI * 2
                       + 2 * ts * C * 4 + ts * 3 * DI * 4)
                if est <= budget:
                    break
                new_ts = _pick_tile(S, max(ts // 2, 128), 128)
                if new_ts >= ts:
                    break
                ts = new_ts
        assert S % ts == 0

        stats_kernel = functools.partial(_gn_stats_kernel, norm_count, eps)
        ss_shape = jax.ShapeDtypeStruct((B, 1, C), jnp.float32)
        scale, shift = pl.pallas_call(
            stats_kernel,
            out_shape=(ss_shape, ss_shape),
            grid_spec=pltpu.PrefetchScalarGridSpec(
                num_scalar_prefetch=0,
                grid=(B, S // ts),
                in_specs=[
                    pl.BlockSpec((1, ts, C), lambda b, s: (b, s, 0)),
                    pl.BlockSpec((1, C), lambda b, s: (0, 0)),
                    pl.BlockSpec((1, C), lambda b, s: (0, 0)),
                    pl.BlockSpec((C, num_groups), lambda b, s: (0, 0)),
                    pl.BlockSpec((num_groups, C), lambda b, s: (0, 0)),
                ],
                out_specs=(
                    pl.BlockSpec((1, 1, C), lambda b, s: (b, 0, 0)),
                    pl.BlockSpec((1, 1, C), lambda b, s: (b, 0, 0)),
                ),
                scratch_shapes=[pltpu.VMEM((1, C), jnp.float32),
                                pltpu.VMEM((1, C), jnp.float32)],
            ),
            compiler_params=pltpu.CompilerParams(
                dimension_semantics=("parallel", "arbitrary"),
                vmem_limit_bytes=vmem_limit),
        )(x, gamma, beta, gmap, gmapT)

        qkv_kernel = functools.partial(_qkv_split_kernel, num_heads, head_dim)
        q, k, v = pl.pallas_call(
            qkv_kernel,
            out_shape=qkv_shapes,
            grid_spec=pltpu.PrefetchScalarGridSpec(
                num_scalar_prefetch=0,
                grid=(B, S // ts),
                in_specs=[
                    pl.BlockSpec((1, ts, C), lambda b, s: (b, s, 0)),
                    pl.BlockSpec((1, 1, C), lambda b, s: (b, 0, 0)),
                    pl.BlockSpec((1, 1, C), lambda b, s: (b, 0, 0)),
                    pl.BlockSpec((C, 3 * DI), lambda b, s: (0, 0)),
                    pl.BlockSpec((1, 3 * DI), lambda b, s: (0, 0)),
                ],
                out_specs=tuple(
                    pl.BlockSpec((1, num_heads, ts, head_dim), lambda b, s: (b, 0, s, 0))
                    for _ in range(3)),
            ),
            compiler_params=pltpu.CompilerParams(
                dimension_semantics=("parallel", "parallel"),
                vmem_limit_bytes=vmem_limit),
            cost_estimate=pl.CostEstimate(
                flops=int(2 * B * S * C * 3 * DI),
                transcendentals=0,
                bytes_accessed=int(B * S * C * x_item + 3 * B * S * DI * 2
                                   + C * 3 * DI * 2)),
        )(x, scale, shift, wqkv, bqkv)

    # ------------------------------------------------------------------
    # Stage 3: flash attention + output projection + residual
    # ------------------------------------------------------------------
    tq = block_q or _pick_tile(S, 512, mxu_mult)
    if (block_q is None and gen >= 7 and B == 1 and tq >= S
            and S % 2 == 0 and (S // 2) % 8 == 0):
        tq = S // 2   # keep both v7x TensorCores busy when B == 1

    def _flash_vmem(tq_, tk_):
        return (4 * tq_ * C * x_item                 # x + out blocks (double-buffered)
                + 2 * tq_ * DI * 2                   # q
                + 4 * tk_ * DI * 2                   # k + v
                + 2 * DI * C * 2 + 2 * C * 4         # wo, bo
                + 2 * num_heads * tq_ * 4            # m, l scratch
                + tq_ * DI * 4)                      # acc scratch

    if block_kv is not None:
        tk = block_kv
    else:
        # Keep K/V fully resident across q tiles when they fit: removes the
        # S/tq K/V re-read factor (the dominant HBM term of the flash loop).
        tk = S if _flash_vmem(tq, S) <= budget else _pick_tile(S, 1024, mxu_mult)
        while tk > 128 and _flash_vmem(tq, tk) > budget:
            new_tk = _pick_tile(S, max(tk // 2, 128), 128)
            if new_tk >= tk:
                break
            tk = new_tk
    if block_q is None:
        while tq > 128 and _flash_vmem(tq, tk) > budget:
            new_tq = _pick_tile(S, max(tq // 2, 128), 128)
            if new_tq >= tq:
                break
            tq = new_tq
    assert S % tq == 0 and S % tk == 0

    flash_kernel = functools.partial(_flash_attn_kernel, num_heads, use_bf16_exp)
    kv_reads = 1 if tk == S else (S // tq)
    out = pl.pallas_call(
        flash_kernel,
        out_shape=jax.ShapeDtypeStruct((B, S, C), x.dtype),
        grid_spec=pltpu.PrefetchScalarGridSpec(
            num_scalar_prefetch=0,
            grid=(B, S // tq, S // tk),
            in_specs=[
                pl.BlockSpec((1, tq, C), lambda b, i, j: (b, i, 0)),                    # residual
                pl.BlockSpec((1, num_heads, tq, head_dim), lambda b, i, j: (b, 0, i, 0)),
                pl.BlockSpec((1, num_heads, tk, head_dim), lambda b, i, j: (b, 0, j, 0)),
                pl.BlockSpec((1, num_heads, tk, head_dim), lambda b, i, j: (b, 0, j, 0)),
                pl.BlockSpec((num_heads, head_dim, C), lambda b, i, j: (0, 0, 0)),       # wo
                pl.BlockSpec((1, C), lambda b, i, j: (0, 0)),                            # bo
            ],
            out_specs=pl.BlockSpec((1, tq, C), lambda b, i, j: (b, i, 0)),
            scratch_shapes=[
                pltpu.VMEM((num_heads, tq, 1), jnp.float32),          # running max
                pltpu.VMEM((num_heads, tq, 1), jnp.float32),          # running denom
                pltpu.VMEM((num_heads, tq, head_dim), jnp.float32),   # output accumulator
            ],
        ),
        compiler_params=pltpu.CompilerParams(
            dimension_semantics=("parallel", "parallel", "arbitrary"),
            vmem_limit_bytes=vmem_limit),
        cost_estimate=pl.CostEstimate(
            flops=int(4 * B * num_heads * S * S * head_dim + 2 * B * S * DI * C),
            transcendentals=int(B * num_heads * S * S),
            bytes_accessed=int(2 * B * S * C * x_item + B * S * DI * 2
                               + 2 * B * S * DI * 2 * kv_reads
                               + num_heads * head_dim * C * 2)),
    )(x, q, k, v, wo, bo)
    return out


# ---------------------------------------------------------------------------
# Pure-JAX reference mirroring the PyTorch forward
# ---------------------------------------------------------------------------
def attention_reference(x, params, *, num_heads, head_dim, num_groups, eps=1e-6):
    B, S, C = x.shape
    cg = C // num_groups
    xt = jnp.transpose(x, (0, 2, 1)).reshape(B, num_groups, cg, S)
    mean = jnp.mean(xt, axis=(2, 3), keepdims=True)
    var = jnp.mean((xt - mean) ** 2, axis=(2, 3), keepdims=True)
    xn = ((xt - mean) / jnp.sqrt(var + eps)).reshape(B, C, S)
    xn = xn * params["gn_weight"][None, :, None] + params["gn_bias"][None, :, None]
    h = jnp.transpose(xn, (0, 2, 1))                       # (B, S, C)

    q = h @ params["wq"].T + params["bq"]
    k = h @ params["wk"].T + params["bk"]
    v = h @ params["wv"].T + params["bv"]
    q = q.reshape(B, S, num_heads, head_dim).transpose(0, 2, 1, 3)
    k = k.reshape(B, S, num_heads, head_dim).transpose(0, 2, 1, 3)
    v = v.reshape(B, S, num_heads, head_dim).transpose(0, 2, 1, 3)
    scale = 1.0 / math.sqrt(head_dim)
    s = jnp.einsum("bhqd,bhkd->bhqk", q, k) * scale
    p = jax.nn.softmax(s, axis=-1)
    o = jnp.einsum("bhqk,bhkd->bhqd", p, v)
    o = o.transpose(0, 2, 1, 3).reshape(B, S, num_heads * head_dim)
    out = o @ params["wo"].T + params["bo"]
    return x + out


def make_params(key, in_channels, num_heads, head_dim):
    dim_inner = num_heads * head_dim
    ks = jax.random.split(key, 8)
    scale_qkv = 1.0 / math.sqrt(in_channels)
    scale_o = 1.0 / math.sqrt(dim_inner)
    return {
        "gn_weight": jnp.ones((in_channels,), jnp.float32),
        "gn_bias": jnp.zeros((in_channels,), jnp.float32),
        "wq": jax.random.uniform(ks[0], (dim_inner, in_channels), jnp.float32, -scale_qkv, scale_qkv),
        "bq": jax.random.uniform(ks[1], (dim_inner,), jnp.float32, -scale_qkv, scale_qkv),
        "wk": jax.random.uniform(ks[2], (dim_inner, in_channels), jnp.float32, -scale_qkv, scale_qkv),
        "bk": jax.random.uniform(ks[3], (dim_inner,), jnp.float32, -scale_qkv, scale_qkv),
        "wv": jax.random.uniform(ks[4], (dim_inner, in_channels), jnp.float32, -scale_qkv, scale_qkv),
        "bv": jax.random.uniform(ks[5], (dim_inner,), jnp.float32, -scale_qkv, scale_qkv),
        "wo": jax.random.uniform(ks[6], (in_channels, dim_inner), jnp.float32, -scale_o, scale_o),
        "bo": jax.random.uniform(ks[7], (in_channels,), jnp.float32, -scale_o, scale_o),
    }


if __name__ == "__main__":
    # Small but layout-meaningful shapes: C=128 (32 groups of 4), 2 heads of
    # head_dim=64 (exercises the per-head leading-axis path), S=256 so explicit
    # 128-tiles give a 2x2 (q, kv) flash grid with a real online softmax.
    B, S, C = 2, 256, 128
    num_heads, head_dim, num_groups = 2, 64, 32

    key = jax.random.PRNGKey(0)
    kx, kp = jax.random.split(key)
    x = jax.random.normal(kx, (B, S, C), jnp.float32)
    params = make_params(kp, C, num_heads, head_dim)

    ref = attention_reference(x, params, num_heads=num_heads, head_dim=head_dim,
                              num_groups=num_groups)

    # Path 1: fused GroupNorm+QKV, multi-tile flash (2 q tiles x 2 kv tiles).
    out_fused = attention_forward(x, params, num_heads=num_heads, head_dim=head_dim,
                                  num_groups=num_groups, fuse_gn_qkv=True,
                                  block_q=128, block_kv=128)
    out_fused = jax.block_until_ready(out_fused)
    assert out_fused.shape == (B, S, C)
    err = float(jnp.max(jnp.abs(out_fused - ref)))
    # bf16 MXU operands (and bf16 exp on v6e/v7x) -> relaxed vs f32 reference
    assert jnp.allclose(out_fused, ref, atol=5e-2, rtol=5e-2), f"fused max err {err}"

    # Path 2: streaming stats+QKV kernels, fully KV-resident flash (auto tiles).
    out_split = attention_forward(x, params, num_heads=num_heads, head_dim=head_dim,
                                  num_groups=num_groups, fuse_gn_qkv=False,
                                  block_s=128)
    out_split = jax.block_until_ready(out_split)
    err = float(jnp.max(jnp.abs(out_split - ref)))
    assert jnp.allclose(out_split, ref, atol=5e-2, rtol=5e-2), f"split max err {err}"

    print("KERNEL_OK")
</pallas_src>

<mosaic_0001>
module attributes {stable_mosaic.version = 11 : i64} {
  func.func @_gn_qkv_fused_kernel(%arg0: i32, %arg1: memref<1x256x128xf32, #tpu.memory_space<vmem>>, %arg2: memref<1x128xf32, #tpu.memory_space<vmem>>, %arg3: memref<1x128xf32, #tpu.memory_space<vmem>>, %arg4: memref<128x32xf32, #tpu.memory_space<vmem>>, %arg5: memref<32x128xf32, #tpu.memory_space<vmem>>, %arg6: memref<128x384xbf16, #tpu.memory_space<vmem>>, %arg7: memref<1x384xf32, #tpu.memory_space<vmem>>, %arg8: memref<1x2x256x64xbf16, #tpu.memory_space<vmem>>, %arg9: memref<1x2x256x64xbf16, #tpu.memory_space<vmem>>, %arg10: memref<1x2x256x64xbf16, #tpu.memory_space<vmem>>) attributes {dimension_semantics = [#tpu.dimension_semantics<parallel>], iteration_bounds = array<i64: 2>, scalar_prefetch = 0 : i64, scratch_operands = 0 : i64, tpu.core_type = #tpu.core_type<tc>, window_params = [{transform_indices = @transform_0, window_bounds = array<i64: 1, 256, 128>}, {pipeline_mode = #tpu.pipeline_mode<synchronous>, transform_indices = @transform_1, window_bounds = array<i64: 1, 128>}, {pipeline_mode = #tpu.pipeline_mode<synchronous>, transform_indices = @transform_2, window_bounds = array<i64: 1, 128>}, {pipeline_mode = #tpu.pipeline_mode<synchronous>, transform_indices = @transform_3, window_bounds = array<i64: 128, 32>}, {pipeline_mode = #tpu.pipeline_mode<synchronous>, transform_indices = @transform_4, window_bounds = array<i64: 32, 128>}, {pipeline_mode = #tpu.pipeline_mode<synchronous>, transform_indices = @transform_5, window_bounds = array<i64: 128, 384>}, {pipeline_mode = #tpu.pipeline_mode<synchronous>, transform_indices = @transform_6, window_bounds = array<i64: 1, 384>}, {transform_indices = @transform_7, window_bounds = array<i64: 1, 2, 256, 64>}, {transform_indices = @transform_8, window_bounds = array<i64: 1, 2, 256, 64>}, {transform_indices = @transform_9, window_bounds = array<i64: 1, 2, 256, 64>}]} {
    %c0 = arith.constant 0 : index
    %c0_0 = arith.constant 0 : index
    %c0_1 = arith.constant 0 : index
    %0 = vector.load %arg1[%c0, %c0_0, %c0_1] : memref<1x256x128xf32, #tpu.memory_space<vmem>>, vector<1x256x128xf32>
    %1 = vector.shape_cast %0 : vector<1x256x128xf32> to vector<256x128xf32>
    %cst = arith.constant dense<0.000000e+00> : vector<128xf32>
    %2 = vector.multi_reduction <add>, %1, %cst [0] : vector<256x128xf32> to vector<128xf32>
    %3 = vector.shape_cast %2 : vector<128xf32> to vector<1x128xf32>
    %c0_2 = arith.constant 0 : index
    %c0_3 = arith.constant 0 : index
    %4 = vector.load %arg4[%c0_2, %c0_3] : memref<128x32xf32, #tpu.memory_space<vmem>>, vector<128x32xf32>
    %cst_4 = arith.constant dense<0.000000e+00> : vector<1x32xf32>
    %5 = tpu.matmul %3, %4, %cst_4 {dimension_numbers = #tpu.dot_dimension_numbers<[1], [0], [0], [1], [0, 0, 1, 1], [], []>} : vector<1x128xf32>, vector<128x32xf32>, vector<1x32xf32> -> vector<1x32xf32>
    %c0_5 = arith.constant 0 : index
    %c0_6 = arith.constant 0 : index
    %6 = vector.load %arg5[%c0_5, %c0_6] : memref<32x128xf32, #tpu.memory_space<vmem>>, vector<32x128xf32>
    %cst_7 = arith.constant dense<0.000000e+00> : vector<1x128xf32>
    %7 = tpu.matmul %5, %6, %cst_7 {dimension_numbers = #tpu.dot_dimension_numbers<[1], [0], [0], [1], [0, 0, 1, 1], [], []>} : vector<1x32xf32>, vector<32x128xf32>, vector<1x128xf32> -> vector<1x128xf32>
    %cst_8 = arith.constant 1.024000e+03 : f32
    %8 = vector.broadcast %cst_8 : f32 to vector<1x128xf32>
    %9 = arith.divf %7, %8 : vector<1x128xf32>
    %10 = vector.broadcast %9 : vector<1x128xf32> to vector<256x128xf32>
    %11 = arith.subf %1, %10 : vector<256x128xf32>
    %12 = arith.mulf %11, %11 : vector<256x128xf32>
    %cst_9 = arith.constant dense<0.000000e+00> : vector<128xf32>
    %13 = vector.multi_reduction <add>, %12, %cst_9 [0] : vector<256x128xf32> to vector<128xf32>
    %14 = vector.shape_cast %13 : vector<128xf32> to vector<1x128xf32>
    %c0_10 = arith.constant 0 : index
    %c0_11 = arith.constant 0 : index
    %15 = vector.load %arg4[%c0_10, %c0_11] : memref<128x32xf32, #tpu.memory_space<vmem>>, vector<128x32xf32>
    %cst_12 = arith.constant dense<0.000000e+00> : vector<1x32xf32>
    %16 = tpu.matmul %14, %15, %cst_12 {dimension_numbers = #tpu.dot_dimension_numbers<[1], [0], [0], [1], [0, 0, 1, 1], [], []>} : vector<1x128xf32>, vector<128x32xf32>, vector<1x32xf32> -> vector<1x32xf32>
    %c0_13 = arith.constant 0 : index
    %c0_14 = arith.constant 0 : index
    %17 = vector.load %arg5[%c0_13, %c0_14] : memref<32x128xf32, #tpu.memory_space<vmem>>, vector<32x128xf32>
    %cst_15 = arith.constant dense<0.000000e+00> : vector<1x128xf32>
    %18 = tpu.matmul %16, %17, %cst_15 {dimension_numbers = #tpu.dot_dimension_numbers<[1], [0], [0], [1], [0, 0, 1, 1], [], []>} : vector<1x32xf32>, vector<32x128xf32>, vector<1x128xf32> -> vector<1x128xf32>
    %cst_16 = arith.constant 1.024000e+03 : f32
    %19 = vector.broadcast %cst_16 : f32 to vector<1x128xf32>
    %20 = arith.divf %18, %19 : vector<1x128xf32>
    %c0_17 = arith.constant 0 : index
    %c0_18 = arith.constant 0 : index
    %21 = vector.load %arg2[%c0_17, %c0_18] : memref<1x128xf32, #tpu.memory_space<vmem>>, vector<1x128xf32>
    %cst_19 = arith.constant 9.99999997E-7 : f32
    %22 = vector.broadcast %cst_19 : f32 to vector<1x128xf32>
    %23 = arith.addf %20, %22 : vector<1x128xf32>
    %24 = math.rsqrt %23 : vector<1x128xf32>
    %25 = arith.mulf %21, %24 : vector<1x128xf32>
    %26 = vector.broadcast %25 : vector<1x128xf32> to vector<256x128xf32>
    %27 = arith.mulf %11, %26 : vector<256x128xf32>
    %c0_20 = arith.constant 0 : index
    %c0_21 = arith.constant 0 : index
    %28 = vector.load %arg3[%c0_20, %c0_21] : memref<1x128xf32, #tpu.memory_space<vmem>>, vector<1x128xf32>
    %29 = vector.broadcast %28 : vector<1x128xf32> to vector<256x128xf32>
    %30 = arith.addf %27, %29 : vector<256x128xf32>
    %31 = arith.truncf %30 : vector<256x128xf32> to vector<256x128xbf16>
    %c0_22 = arith.constant 0 : index
    %c0_23 = arith.constant 0 : index
    %32 = vector.load %arg6[%c0_22, %c0_23] : memref<128x384xbf16, #tpu.memory_space<vmem>>, vector<128x384xbf16>
    %cst_24 = arith.constant dense<0.000000e+00> : vector<256x384xf32>
    %33 = tpu.matmul %31, %32, %cst_24 {dimension_numbers = #tpu.dot_dimension_numbers<[1], [0], [0], [1], [0, 0, 1, 1], [], []>} : vector<256x128xbf16>, vector<128x384xbf16>, vector<256x384xf32> -> vector<256x384xf32>
    %c0_25 = arith.constant 0 : index
    %c0_26 = arith.constant 0 : index
    %34 = vector.load %arg7[%c0_25, %c0_26] : memref<1x384xf32, #tpu.memory_space<vmem>>, vector<1x384xf32>
    %35 = vector.broadcast %34 : vector<1x384xf32> to vector<256x384xf32>
    %36 = arith.addf %33, %35 : vector<256x384xf32>
    %37 = arith.truncf %36 : vector<256x384xf32> to vector<256x384xbf16>
    %38 = vector.extract_strided_slice %37 {offsets = [0, 0], sizes = [256, 64], strides = [1, 1]} : vector<256x384xbf16> to vector<256x64xbf16>
    %c0_27 = arith.constant 0 : index
    %c0_28 = arith.constant 0 : index
    %c0_29 = arith.constant 0 : index
    %c0_30 = arith.constant 0 : index
    %39 = vector.load %arg8[%c0_27, %c0_28, %c0_29, %c0_30] : memref<1x2x256x64xbf16, #tpu.memory_space<vmem>>, vector<1x1x256x64xbf16>
    %40 = vector.shape_cast %39 : vector<1x1x256x64xbf16> to vector<256x64xbf16>
    %41 = vector.shape_cast %38 : vector<256x64xbf16> to vector<1x1x256x64xbf16>
    tpu.vector_store %arg8[%c0_27, %c0_28, %c0_29, %c0_30], %41 {strides = array<i32>} : memref<1x2x256x64xbf16, #tpu.memory_space<vmem>>, vector<1x1x256x64xbf16>,
    %42 = vector.extract_strided_slice %37 {offsets = [0, 128], sizes = [256, 64], strides = [1, 1]} : vector<256x384xbf16> to vector<256x64xbf16>
    %c0_31 = arith.constant 0 : index
    %c0_32 = arith.constant 0 : index
    %c0_33 = arith.constant 0 : index
    %c0_34 = arith.constant 0 : index
    %43 = vector.load %arg9[%c0_31, %c0_32, %c0_33, %c0_34] : memref<1x2x256x64xbf16, #tpu.memory_space<vmem>>, vector<1x1x256x64xbf16>
    %44 = vector.shape_cast %43 : vector<1x1x256x64xbf16> to vector<256x64xbf16>
    %45 = vector.shape_cast %42 : vector<256x64xbf16> to vector<1x1x256x64xbf16>
    tpu.vector_store %arg9[%c0_31, %c0_32, %c0_33, %c0_34], %45 {strides = array<i32>} : memref<1x2x256x64xbf16, #tpu.memory_space<vmem>>, vector<1x1x256x64xbf16>,
    %46 = vector.extract_strided_slice %37 {offsets = [0, 256], sizes = [256, 64], strides = [1, 1]} : vector<256x384xbf16> to vector<256x64xbf16>
    %c0_35 = arith.constant 0 : index
    %c0_36 = arith.constant 0 : index
    %c0_37 = arith.constant 0 : index
    %c0_38 = arith.constant 0 : index
    %47 = vector.load %arg10[%c0_35, %c0_36, %c0_37, %c0_38] : memref<1x2x256x64xbf16, #tpu.memory_space<vmem>>, vector<1x1x256x64xbf16>
    %48 = vector.shape_cast %47 : vector<1x1x256x64xbf16> to vector<256x64xbf16>
    %49 = vector.shape_cast %46 : vector<256x64xbf16> to vector<1x1x256x64xbf16>
    tpu.vector_store %arg10[%c0_35, %c0_36, %c0_37, %c0_38], %49 {strides = array<i32>} : memref<1x2x256x64xbf16, #tpu.memory_space<vmem>>, vector<1x1x256x64xbf16>,
    %50 = vector.extract_strided_slice %37 {offsets = [0, 64], sizes = [256, 64], strides = [1, 1]} : vector<256x384xbf16> to vector<256x64xbf16>
    %c0_39 = arith.constant 0 : index
    %c1 = arith.constant 1 : index
    %c0_40 = arith.constant 0 : index
    %c0_41 = arith.constant 0 : index
    %51 = vector.load %arg8[%c0_39, %c1, %c0_40, %c0_41] : memref<1x2x256x64xbf16, #tpu.memory_space<vmem>>, vector<1x1x256x64xbf16>
    %52 = vector.shape_cast %51 : vector<1x1x256x64xbf16> to vector<256x64xbf16>
    %53 = vector.shape_cast %50 : vector<256x64xbf16> to vector<1x1x256x64xbf16>
    tpu.vector_store %arg8[%c0_39, %c1, %c0_40, %c0_41], %53 {strides = array<i32>} : memref<1x2x256x64xbf16, #tpu.memory_space<vmem>>, vector<1x1x256x64xbf16>,
    %54 = vector.extract_strided_slice %37 {offsets = [0, 192], sizes = [256, 64], strides = [1, 1]} : vector<256x384xbf16> to vector<256x64xbf16>
    %c0_42 = arith.constant 0 : index
    %c1_43 = arith.constant 1 : index
    %c0_44 = arith.constant 0 : index
    %c0_45 = arith.constant 0 : index
    %55 = vector.load %arg9[%c0_42, %c1_43, %c0_44, %c0_45] : memref<1x2x256x64xbf16, #tpu.memory_space<vmem>>, vector<1x1x256x64xbf16>
    %56 = vector.shape_cast %55 : vector<1x1x256x64xbf16> to vector<256x64xbf16>
    %57 = vector.shape_cast %54 : vector<256x64xbf16> to vector<1x1x256x64xbf16>
    tpu.vector_store %arg9[%c0_42, %c1_43, %c0_44, %c0_45], %57 {strides = array<i32>} : memref<1x2x256x64xbf16, #tpu.memory_space<vmem>>, vector<1x1x256x64xbf16>,
    %58 = vector.extract_strided_slice %37 {offsets = [0, 320], sizes = [256, 64], strides = [1, 1]} : vector<256x384xbf16> to vector<256x64xbf16>
    %c0_46 = arith.constant 0 : index
    %c1_47 = arith.constant 1 : index
    %c0_48 = arith.constant 0 : index
    %c0_49 = arith.constant 0 : index
    %59 = vector.load %arg10[%c0_46, %c1_47, %c0_48, %c0_49] : memref<1x2x256x64xbf16, #tpu.memory_space<vmem>>, vector<1x1x256x64xbf16>
    %60 = vector.shape_cast %59 : vector<1x1x256x64xbf16> to vector<256x64xbf16>
    %61 = vector.shape_cast %58 : vector<256x64xbf16> to vector<1x1x256x64xbf16>
    tpu.vector_store %arg10[%c0_46, %c1_47, %c0_48, %c0_49], %61 {strides = array<i32>} : memref<1x2x256x64xbf16, #tpu.memory_space<vmem>>, vector<1x1x256x64xbf16>,
    return
  }
  func.func @transform_0(%arg0: i32) -> (i32, i32, i32) {
    %c0_i32 = arith.constant 0 : i32
    %c0_i32_0 = arith.constant 0 : i32
    %c0_i32_1 = arith.constant 0 : i32
    return %arg0, %c0_i32, %c0_i32_0 : i32, i32, i32
  }
  func.func @transform_1(%arg0: i32) -> (i32, i32) {
    %c0_i32 = arith.constant 0 : i32
    %c0_i32_0 = arith.constant 0 : i32
    %c0_i32_1 = arith.constant 0 : i32
    return %c0_i32, %c0_i32_0 : i32, i32
  }
  func.func @transform_2(%arg0: i32) -> (i32, i32) {
    %c0_i32 = arith.constant 0 : i32
    %c0_i32_0 = arith.constant 0 : i32
    %c0_i32_1 = arith.constant 0 : i32
    return %c0_i32, %c0_i32_0 : i32, i32
  }
  func.func @transform_3(%arg0: i32) -> (i32, i32) {
    %c0_i32 = arith.constant 0 : i32
    %c0_i32_0 = arith.constant 0 : i32
    %c0_i32_1 = arith.constant 0 : i32
    return %c0_i32, %c0_i32_0 : i32, i32
  }
  func.func @transform_4(%arg0: i32) -> (i32, i32) {
    %c0_i32 = arith.constant 0 : i32
    %c0_i32_0 = arith.constant 0 : i32
    %c0_i32_1 = arith.constant 0 : i32
    return %c0_i32, %c0_i32_0 : i32, i32
  }
  func.func @transform_5(%arg0: i32) -> (i32, i32) {
    %c0_i32 = arith.constant 0 : i32
    %c0_i32_0 = arith.constant 0 : i32
    %c0_i32_1 = arith.constant 0 : i32
    return %c0_i32, %c0_i32_0 : i32, i32
  }
  func.func @transform_6(%arg0: i32) -> (i32, i32) {
    %c0_i32 = arith.constant 0 : i32
    %c0_i32_0 = arith.constant 0 : i32
    %c0_i32_1 = arith.constant 0 : i32
    return %c0_i32, %c0_i32_0 : i32, i32
  }
  func.func @transform_7(%arg0: i32) -> (i32, i32, i32, i32) {
    %c0_i32 = arith.constant 0 : i32
    %c0_i32_0 = arith.constant 0 : i32
    %c0_i32_1 = arith.constant 0 : i32
    %c0_i32_2 = arith.constant 0 : i32
    return %arg0, %c0_i32, %c0_i32_0, %c0_i32_1 : i32, i32, i32, i32
  }
  func.func @transform_8(%arg0: i32) -> (i32, i32, i32, i32) {
    %c0_i32 = arith.constant 0 : i32
    %c0_i32_0 = arith.constant 0 : i32
    %c0_i32_1 = arith.constant 0 : i32
    %c0_i32_2 = arith.constant 0 : i32
    return %arg0, %c0_i32, %c0_i32_0, %c0_i32_1 : i32, i32, i32, i32
  }
  func.func @transform_9(%arg0: i32) -> (i32, i32, i32, i32) {
    %c0_i32 = arith.constant 0 : i32
    %c0_i32_0 = arith.constant 0 : i32
    %c0_i32_1 = arith.constant 0 : i32
    %c0_i32_2 = arith.constant 0 : i32
    return %arg0, %c0_i32, %c0_i32_0, %c0_i32_1 : i32, i32, i32, i32
  }
}

</mosaic_0001>

<bundles_post_ra>
// kernel: tpu_custom_call.1
= control target key start
LH: loop header
LB: loop body
LE: loop exit
PB: predicated region body
PF: predicated region fallthrough
CT: control target
= control target key end

     0   :  { %s5749_s0 = inlined_call_operand.hbm [shape: f32[2,256,128], index: 0, kind: input, shape index: {}]   ;;  %s5750_s1 = inlined_call_operand.hbm [shape: f32[1,128], index: 1, kind: input, shape index: {}]   ;;  %s5751_s2 = inlined_call_operand.hbm [shape: f32[1,128], index: 2, kind: input, shape index: {}]   ;;  %s5752_s3 = inlined_call_operand.hbm [shape: f32[128,32], index: 3, kind: input, shape index: {}]   ;;  %s5753_s4 = inlined_call_operand.hbm [shape: f32[32,128], index: 4, kind: input, shape index: {}]   ;;  %s5754_s5 = inlined_call_operand.hbm [shape: bf16[128,384], index: 5, kind: input, shape index: {}]   ;;  %s5755_s6 = inlined_call_operand.hbm [shape: f32[1,384], index: 6, kind: input, shape index: {}]   ;;  %s5756_s7 = inlined_call_operand.hbm [shape: bf16[2,2,256,64], index: 7, kind: output, shape index: {0}]   ;;  %s5757_s8 = inlined_call_operand.hbm [shape: bf16[2,2,256,64], index: 8, kind: output, shape index: {1}]   ;;  %s5758_s9 = inlined_call_operand.hbm [shape: bf16[2,2,256,64], index: 9, kind: output, shape index: {2}]  }
   0x1   :  { %5768 = sst [smem:[#allocation24_spill]] %s5750_s1 }
   0x2   :  { %5769 = sst [smem:[#allocation25_spill]] %s5752_s3 }
   0x3   :  { %5770 = sst [smem:[#allocation26_spill]] %s5758_s9 }
   0x4   :  { %15 = vsyncpa [#allocation3], 0 }
   0x5   :  { %17 = vsyncpa [#allocation3 + $0x1], 0 }
   0x6   :  { %18 = vsyncpa [#allocation6], 0 }
   0x7   :  { %19 = vsyncpa [#allocation9], 0 }
   0x8   :  { %20 = vsyncpa [#allocation12], 0 }
   0x9   :  { %21 = vsyncpa [#allocation4], 0 }
   0xa   :  { %23 = vsyncpa [#allocation4 + $0x1], 0 }
   0xb   :  { %24 = vsyncpa [#allocation16], 0 }
   0xc   :  { %26 = vsyncpa [#allocation16 + $0x1], 0  ;;  %s3868_s30 = smov 0   ;;  %s3870_s10 = smov 0  }
   0xd   :  { %s3872_s11 = smov 0   ;;  %s3874_s12 = smov 0  }
   0xe LB: > { %s3798_s13 = smov [#allocation5]   ;;  %s3889_s15 = sadd.s32 4294967295, %s3796_s12   ;;  %s3796_s12 = sphi %s3874_s12, %s5802_s12   ;;  %s3792_s11 = sphi %s3872_s11, %s5801_s11   ;;  %s3788_s10 = sphi %s3870_s10, %s5800_s10   ;;  %s3784_s30 = sphi %s3868_s30, %s5799_s30  }
   0xf   : > { %s280_s14 = sshll.u32 %s3798_s13, 4  ;;  %p2679_p0 = scmp.ge.s32.totalorder %s3796_s12, 1  ;;  %s3894_s14 = int_to_ptr.vmem [resolvable:$true] %s280_s14 }
  0x10   : > { %p5764_p1 = scmp.eq.s32.totalorder %s3889_s15, 0  ;;  %p267_p2 = scmp.lt.s32.totalorder %s3796_s12, 3 }
  0x11   : > { %s3799_s17 = smov [#allocation8]   ;;  %s3800_s20 = smov [#allocation11]  }
  0x12   : > { %p3896_p3 = pnand %p2679_p0, %p267_p2  ;;  %s301_s18 = sshll.u32 %s3799_s17, 4  ;;  %s3903_s18 = int_to_ptr.vmem [resolvable:$true] %s301_s18 }
  0x13   : > { %s327_s21 = sshll.u32 %s3800_s20, 4  ;;  %s5773_s1 = sld [smem:[#allocation24_spill]]  ;;  %s3911_s21 = int_to_ptr.vmem [resolvable:$true] %s327_s21 }
  0x14   : > { %s5771_s16 = scalar_select %p3896_p3, 1, 0 }
  0x15   : > { %p3331_p5 = pneg %p3896_p3 }
  0x17   : > { %p3907_p6 = pnand %p3331_p5, %p5764_p1 }
  0x19   : > { %s3460_s24 = scalar_lea.hbm %s5773_s1, 16  ;;  %p3921_p8 = pneg %p3907_p6 }
  0x1a   : > { %p3461_p7 = scmp.ne.s32.totalorder %s5773_s1, %s3460_s24  ;;  %p3467_p11 = scmp.lt.u32.totalorder %s3460_s24, %s5773_s1 }
  0x1c   : > { %p3463_p9 = pnand %p3921_p8, %p3461_p7 }
  0x1e   : > { %p3464_p10 = pneg %p3463_p9 }
  0x20   : > { %p3469_p12 = pnand %p3467_p11, %p3464_p10 }
  0x22   : > { %3472 = shalt.err (!%p3469_p12)
}
  0x23   : > { %s3473_s13 = scalar_lea.vmem %s3894_s14, 16  ;;  %s3480_s17 = scalar_lea.vmem %s3894_s14, 32 }
  0x24   : > { %p3474_p13 = scmp.ne.s32.totalorder %s3894_s14, %s3473_s13  ;;  %p3481_p5 = scmp.lt.s32.totalorder %s3894_s14, %s3894_s14 }
  0x25   : > { %p3482_p7 = scmp.lt.s32.totalorder %s3480_s17, %s3473_s13 }
  0x26   : > { %p3476_p0 = pnand %p3474_p13, %p3921_p8 }
  0x27   : > { %p3483_p9 = por %p3482_p7, %p3481_p5 }
  0x28   : > { %p3477_p2 = pneg %p3476_p0 }
  0x2a   : > { %p3484_p4 = pnand %p3483_p9, %p3477_p2 }
  0x2c   : > { %3487 = shalt.err (!%p3484_p4)
}
  0x2d   : > { %3334 = dma.hbm_to_vmem [thread:$0]  (!%p3907_p6), %s5773_s1, 16, %s3894_s14, [#allocation6]  }
  0x2e   : > { %s5775_s3 = sld [smem:[#allocation25_spill]] }
  0x34   : > { %s3488_s25 = scalar_lea.hbm %s5775_s3, 2048 }
  0x35   : > { %p3489_p10 = scmp.ne.s32.totalorder %s5775_s3, %s3488_s25  ;;  %p3495_p4 = scmp.lt.u32.totalorder %s3488_s25, %s5775_s3 }
  0x37   : > { %p3491_p11 = pnand %p3489_p10, %p3921_p8 }
  0x39   : > { %p3492_p12 = pneg %p3491_p11 }
  0x3b   : > { %p3497_p13 = pnand %p3495_p4, %p3492_p12 }
  0x3d   : > { %3500 = shalt.err (!%p3497_p13)
}
  0x3e   : > { %s3501_s14 = scalar_lea.vmem %s3903_s18, 2048  ;;  %p3509_p7 = scmp.lt.s32.totalorder %s3903_s18, %s3903_s18 }
  0x3f   : > { %p3502_p0 = scmp.ne.s32.totalorder %s3903_s18, %s3501_s14  ;;  %p3510_p9 = scmp.lt.s32.totalorder %s3501_s14, %s3501_s14 }
  0x41   : > { %p3504_p2 = pnand %p3502_p0, %p3921_p8  ;;  %p3511_p10 = por %p3510_p9, %p3509_p7 }
  0x43   : > { %p3505_p5 = pneg %p3504_p2 }
  0x45   : > { %p3512_p11 = pnand %p3511_p10, %p3505_p5 }
  0x47   : > { %3515 = shalt.err (!%p3512_p11)
}
  0x48   : > { %s5759_s17 = smov 128   ;;  %s5761_s20 = smov 8  }
  0x49   : > { %3340 = dma.hbm_to_vmem [thread:$0]  (!%p3907_p6), %s5775_s3, 2048, %s3903_s18, [#allocation9], %s5759_s17, %s5759_s17, %s5761_s20  }
  0x4a   : > { %s3516_s26 = scalar_lea.hbm %s5754_s5, 3072 }
  0x4b   : > { %p3517_p12 = scmp.ne.s32.totalorder %s5754_s5, %s3516_s26  ;;  %p3523_p0 = scmp.lt.u32.totalorder %s3516_s26, %s5754_s5 }
  0x4d   : > { %p3519_p4 = pnand %p3517_p12, %p3921_p8 }
  0x4f   : > { %p3520_p13 = pneg %p3519_p4 }
  0x51   : > { %p3525_p2 = pnand %p3523_p0, %p3520_p13 }
  0x53   : > { %3528 = shalt.err (!%p3525_p2)
}
  0x54   : > { %s3529_s18 = scalar_lea.vmem %s3911_s21, 3072  ;;  %p3537_p10 = scmp.lt.s32.totalorder %s3911_s21, %s3911_s21 }
  0x55   : > { %p3530_p5 = scmp.ne.s32.totalorder %s3911_s21, %s3529_s18  ;;  %p3538_p11 = scmp.lt.s32.totalorder %s3529_s18, %s3529_s18 }
  0x57   : > { %p3532_p7 = pnand %p3530_p5, %p3921_p8  ;;  %p3539_p12 = por %p3538_p11, %p3537_p10 }
  0x59   : > { %p3533_p9 = pneg %p3532_p7 }
  0x5b   : > { %p3540_p4 = pnand %p3539_p12, %p3533_p9 }
  0x5d   : > { %3543 = shalt.err (!%p3540_p4)
}
  0x5e   : > { %s3803_s22 = smov 192   ;;  %s3804_s23 = smov 12  }
  0x5f   : > { %3346 = dma.hbm_to_vmem [thread:$0]  (!%p3907_p6), %s5754_s5, 3072, %s3911_s21, [#allocation12], %s3803_s22, %s3803_s22, %s3804_s23  }
  0x60   : > { %s3805_s26 = smov [#allocation7]   ;;  %s3806_s29 = smov [#allocation10]  }
  0x61   : > { %s291_s28 = sshll.u32 %s3805_s26, 4  ;;  %s314_s13 = sshll.u32 %s3806_s29, 4  ;;  %s292_s28 = int_to_ptr.vmem [resolvable:$true] %s291_s28  ;;  %s315_s13 = int_to_ptr.vmem [resolvable:$true] %s314_s13 }
  0x62   : > { %s3544_s17 = scalar_lea.hbm %s5751_s2, 16 }
  0x63   : > { %p3545_p13 = scmp.ne.s32.totalorder %s5751_s2, %s3544_s17  ;;  %p3551_p5 = scmp.lt.u32.totalorder %s3544_s17, %s5751_s2 }
  0x65   : > { %p3547_p0 = pnand %p3545_p13, %p3921_p8 }
  0x67   : > { %p3548_p2 = pneg %p3547_p0 }
  0x69   : > { %p3553_p7 = pnand %p3551_p5, %p3548_p2 }
  0x6b   : > { %3556 = shalt.err (!%p3553_p7)
}
  0x6c   : > { %s3557_s21 = scalar_lea.vmem %s292_s28, 16  ;;  %s3564_s22 = scalar_lea.vmem %s292_s28, 32 }
  0x6d   : > { %p3558_p9 = scmp.ne.s32.totalorder %s292_s28, %s3557_s21  ;;  %p3565_p12 = scmp.lt.s32.totalorder %s292_s28, %s292_s28 }
  0x6e   : > { %p3566_p4 = scmp.lt.s32.totalorder %s3564_s22, %s3557_s21 }
  0x6f   : > { %p3560_p10 = pnand %p3558_p9, %p3921_p8 }
  0x70   : > { %p3567_p1 = por %p3566_p4, %p3565_p12 }
  0x71   : > { %p3561_p11 = pneg %p3560_p10 }
  0x73   : > { %p3568_p3 = pnand %p3567_p1, %p3561_p11 }
  0x75   : > { %3571 = shalt.err (!%p3568_p3)
}
  0x76   : > { %3337 = dma.hbm_to_vmem [thread:$0]  (!%p3907_p6), %s5751_s2, 16, %s292_s28, [#allocation6]  }
  0x77   : > { %s3572_s17 = scalar_lea.hbm %s5753_s4, 512 }
  0x78   : > { %p3573_p13 = scmp.ne.s32.totalorder %s5753_s4, %s3572_s17  ;;  %p3579_p3 = scmp.lt.u32.totalorder %s3572_s17, %s5753_s4 }
  0x7a   : > { %p3575_p0 = pnand %p3573_p13, %p3921_p8 }
  0x7c   : > { %p3576_p1 = pneg %p3575_p0 }
  0x7e   : > { %p3581_p2 = pnand %p3579_p3, %p3576_p1 }
  0x80   : > { %3584 = shalt.err (!%p3581_p2)
}
  0x81   : > { %s3585_s29 = scalar_lea.vmem %s315_s13, 512  ;;  %p3593_p10 = scmp.lt.s32.totalorder %s315_s13, %s315_s13 }
  0x82   : > { %p3586_p5 = scmp.ne.s32.totalorder %s315_s13, %s3585_s29  ;;  %p3594_p11 = scmp.lt.s32.totalorder %s3585_s29, %s3585_s29 }
  0x84   : > { %p3588_p7 = pnand %p3586_p5, %p3921_p8  ;;  %p3595_p12 = por %p3594_p11, %p3593_p10 }
  0x86   : > { %p3589_p9 = pneg %p3588_p7 }
  0x88   : > { %p3596_p4 = pnand %p3595_p12, %p3589_p9 }
  0x8a   : > { %3599 = shalt.err (!%p3596_p4)
}
  0x8b   : > { %s5776_s28 = smov 8   ;;  %s5777_s14 = smov 128  }
  0x8c   : > { %3343 = dma.hbm_to_vmem [thread:$0]  (!%p3907_p6), %s5753_s4, 512, %s315_s13, [#allocation9], %s5777_s14, %s5777_s14, %s5776_s28  }
  0x8d   : > { %s3807_s22 = smov [#allocation13]   ;;  %s3600_s9 = scalar_lea.hbm %s5755_s6, 48 }
  0x8e   : > { %s341_s1 = sshll.u32 %s3807_s22, 4  ;;  %p3601_p13 = scmp.ne.s32.totalorder %s5755_s6, %s3600_s9  ;;  %s342_s1 = int_to_ptr.vmem [resolvable:$true] %s341_s1 }
  0x8f   : > { %p3607_p3 = scmp.lt.u32.totalorder %s3600_s9, %s5755_s6 }
  0x90   : > { %p3603_p0 = pnand %p3601_p13, %p3921_p8 }
  0x92   : > { %p3604_p1 = pneg %p3603_p0 }
  0x94   : > { %p3609_p2 = pnand %p3607_p3, %p3604_p1 }
  0x96   : > { %3612 = shalt.err (!%p3609_p2)
}
  0x97   : > { %s3613_s13 = scalar_lea.vmem %s342_s1, 48  ;;  %s3620_s26 = scalar_lea.vmem %s342_s1, 64 }
  0x98   : > { %p3614_p5 = scmp.ne.s32.totalorder %s342_s1, %s3613_s13  ;;  %p3621_p10 = scmp.lt.s32.totalorder %s342_s1, %s342_s1 }
  0x99   : > { %p3622_p11 = scmp.lt.s32.totalorder %s3620_s26, %s3613_s13 }
  0x9a   : > { %p3616_p7 = pnand %p3614_p5, %p3921_p8 }
  0x9b   : > { %p3623_p12 = por %p3622_p11, %p3621_p10 }
  0x9c   : > { %p3617_p9 = pneg %p3616_p7 }
  0x9e   : > { %p3624_p4 = pnand %p3623_p12, %p3617_p9 }
  0xa0   : > { %3627 = shalt.err (!%p3624_p4)
}
  0xa1   : > { %3349 = dma.hbm_to_vmem [thread:$0]  (!%p3907_p6), %s5755_s6, 48, %s342_s1, [#allocation12]  }
  0xa2   : > { %s5766_s19 = sadd.s32 4294967294, %s3796_s12   ;;  %s4051_s27 = sadd.s32 1, %s3796_s12  }
  0xa3   : > { %s36_s21 = ssub.s32 %s3796_s12, %s4051_s27  ;;  %s39_s22 = sadd.s32 1, %s3792_s11 }
  0xa4   : > { %p37_p8 = scmp.eq.s32.totalorder %s36_s21, 0  ;;  %p46_p13 = scmp.ne.s32.totalorder %s3792_s11, %s3788_s10 }
  0xa5   : > { %p47_p0 = scmp.eq.s32.totalorder %s3796_s12, 0  ;;  %p52_p1 = scmp.ne.s32.totalorder %s3788_s10, %s3784_s30 }
  0xa6   : > { %s4062_s20 = scalar_select %p37_p8, %s3792_s11, %s39_s22  }
  0xa7   : > { %p4064_p3 = por %p47_p0, %p46_p13  ;;  %p5779_p2 = scmp.eq.s32.totalorder %s3889_s15, 0 }
  0xa8   : > { %p202_p5 = scmp.eq.s32.totalorder %s3889_s15, 1  ;;  %p208_p7 = scmp.eq.s32.totalorder %s5766_s19, 1 }
  0xa9   : > { %p4070_p6 = por %p5779_p2, %p52_p1  ;;  %p3370_p9 = scmp.lt.s32.totalorder %s3796_s12, 2 }
  0xaa   : > { %s352_s9 = sand.u32 1, %s3792_s11   ;;  %p4079_p10 = por %p202_p5, %p46_p13 }
  0xab   : > { %p4083_p11 = por %p208_p7, %p52_p1  ;;  %s2687_s24 = sshll.u32 %s352_s9, 8 }
  0xac   : > { %s5781_s17 = scalar_select %p4079_p10, 1, 0 }
  0xad   : > { %s5782_s23 = scalar_select %p4083_p11, 1, 0 }
  0xae   : > { %s2931_s25 = sshll.u32 %s3796_s12, 12  ;;  %s356_s18 = scalar_lea.vmem [#allocation2], %s2687_s24 }
  0xaf   : > { %s4091_s29 = scalar_lea.hbm %s5749_s0, %s2931_s25  ;;  %s363_s21 = sshll.u32 %s356_s18, 4  ;;  %s4093_s21 = int_to_ptr.vmem [resolvable:$true] %s363_s21 }
  0xb0   : > { %p4097_p12 = pnand %p3370_p9, %p4064_p3  ;;  %s4101_s19 = scalar_lea.sflag [#allocation3], %s352_s9 }
  0xb1   : > { %s3628_s13 = scalar_lea.hbm %s4091_s29, 4096  ;;  %s3633_s3 = scalar_lea.hbm %s5749_s0, 8192 }
  0xb2   : > { %p3629_p4 = scmp.ne.s32.totalorder %s4091_s29, %s3628_s13  ;;  %p3630_p8 = pneg %p4097_p12 }
  0xb3   : > { %p3634_p1 = scmp.lt.u32.totalorder %s4091_s29, %s5749_s0  ;;  %p3635_p3 = scmp.lt.u32.totalorder %s3633_s3, %s3628_s13 }
  0xb4   : > { %p3631_p13 = pnand %p3630_p8, %p3629_p4  ;;  %p3637_p5 = scmp.lt.u32.totalorder %s3628_s13, %s4091_s29 }
  0xb5   : > { %p3636_p2 = por %p3635_p3, %p3634_p1 }
  0xb6   : > { %p3632_p0 = pneg %p3631_p13 }
  0xb7   : > { %p3638_p7 = por %p3637_p5, %p3636_p2 }
  0xb9   : > { %p3639_p9 = pnand %p3638_p7, %p3632_p0 }
  0xbb   : > { %3642 = shalt.err (!%p3639_p9)
}
  0xbc   : > { %s3643_s9 = scalar_lea.vmem %s4093_s21, 4096  ;;  %s3808_s24 = smov [#allocation2]  }
  0xbd   : > { %p3644_p4 = scmp.ne.s32.totalorder %s4093_s21, %s3643_s9  ;;  %s3648_s25 = sshll.u32 %s3808_s24, 4  ;;  %s3649_s25 = int_to_ptr.vmem [resolvable:$false] %s3648_s25 }
  0xbe   : > { %s3650_s26 = scalar_lea.vmem %s3649_s25, 8192  ;;  %p3651_p10 = scmp.lt.s32.totalorder %s4093_s21, %s3649_s25 }
  0xbf   : > { %p3646_p13 = pnand %p3644_p4, %p3630_p8  ;;  %p3652_p1 = scmp.lt.s32.totalorder %s3650_s26, %s3643_s9 }
  0xc1   : > { %p3647_p11 = pneg %p3646_p13  ;;  %p3653_p3 = por %p3652_p1, %p3651_p10 }
  0xc3   : > { %p3654_p2 = pnand %p3653_p3, %p3647_p11 }
  0xc5   : > { %3657 = shalt.err (!%p3654_p2)
}
  0xc6   : > { %3353 = dma.hbm_to_vmem [thread:$0]  (!%p4097_p12), %s4091_s29, 4096, %s4093_s21, %s4101_s19, %s5777_s14, %s5777_s14, %s5776_s28  }
  0xc7   : > { %p5784_p8 = scmp.ne.s32.totalorder %s5771_s16, 0 }
  0xc8   : > { %s4135_s13 = sand.u32 (!%p5784_p8), 1, %s3788_s10  }
  0xc9   : > { %375 = sbr.rel (%p5784_p8) target bundleno = 1830 (0x726), region = 48  ;;  %s4138_s3 = sshll.u32 (!%p5784_p8), %s4135_s13, 8 }
  0xca   : > { %s378_s22 = scalar_lea.sflag (!%p5784_p8), [#allocation3], %s4135_s13  ;;  %s4142_s18 = scalar_lea.vmem (!%p5784_p8), [#allocation2], %s4138_s3 }
  0xd0   : > { %3759 = dma.done.wait (%p4070_p6), %s378_s22, 4096  }
  0xd1   : > { %3761 = vsyncadd (%p4070_p6), %s378_s22, 4294963200  ;;  %p5785_p10 = scmp.eq.s32.totalorder %s3889_s15, 0 }
  0xd3   : > { %3763 = dma.done.wait (%p5785_p10), [#allocation6], 32   ;;  %p5786_p11 = pmov %p5785_p10 }
  0xd4   : > { %p5787_p12 = pmov %p5785_p10 }
  0xd5   : > { %3765 = vsyncadd (%p5786_p11), [#allocation6], 4294967264 }
  0xd6   : > { %3767 = dma.done.wait (%p5787_p12), [#allocation9], 2560   ;;  %p5788_p0 = pmov %p5785_p10 }
  0xd8   : > { %3769 = vsyncadd (%p5788_p0), [#allocation9], 4294964736  ;;  %p5789_p5 = pmov %p5788_p0 }
  0xd9   : > { %p5790_p7 = pmov %p5788_p0 }
  0xda   : > { %3771 = dma.done.wait (%p5789_p5), [#allocation12], 3120  }
  0xdb   : > { %3773 = vsyncadd (%p5790_p7), [#allocation12], 4294964176  ;;  %v3809_v0 = vmov 0.0|0.0   ;;  %vm3810_vm0 = vmmov 0   ;;  %v3811_v1 = vmov 0.0   ;;  %v520_v2 = vld [vmem:[#allocation8] sm:$0xff] }
  0xdc   : > { %3239 = vmatprep.subr.bf16.mxu1 %v3809_v0  ;;  %3131 = vmatprep.mubr.msk.f32.mxu1 %vm3810_vm0, %v3811_v1  ;;  %v521_v3 = vld [vmem:[#allocation8 + $0x8] sm:$0xff]  ;;  %v522_v4 = vld [vmem:[#allocation8 + $0x10] sm:$0xff]  ;;  %v523_v6 = vld [vmem:[#allocation8 + $0x18] sm:$0xff]  ;;  %vm610_vm1 = vcmask 261120   ;;  %vm1723_vm2 = vcmask 519168   ;;  %s4692_s16 = scalar_lea.vmem [#allocation14], %s4138_s3 }
  0xdd   : > { %3293 = vmatprep.subr.bf16.mxu0 %v3809_v0  ;;  %3188 = vmatprep.mubr.msk.f32.mxu0 %vm3810_vm0, %v3811_v1  ;;  %v4166_v5 = vpack.c.bf16 %v521_v3, %v520_v2  ;;  %v4169_v7 = vpack.c.bf16 %v523_v6, %v522_v4  ;;  %v524_v8 = vld [vmem:[#allocation8 + $0x20] sm:$0xff]  ;;  %v525_v9 = vld [vmem:[#allocation8 + $0x28] sm:$0xff]  ;;  %v4187_v15 = vld [vmem:[%s4142_s18 + $0x18] sm:$0xff]  ;;  %s3813_s28 = smov 64   ;;  %s4701_s14 = scalar_lea.vmem [#allocation15], %s4138_s3 }
  0xde   : > { %v4173_v10 = vld [vmem:[%s4142_s18] sm:$0xff]  ;;  %v4176_v11 = vld [vmem:[%s4142_s18 + $0x8] sm:$0xff]  ;;  %v4179_v12 = vld [vmem:[%s4142_s18 + $0x10] sm:$0xff]  ;;  %v4184_v14 = vpack.c.bf16 %v525_v9, %v524_v8  ;;  %s4706_s19 = scalar_lea.vmem [#allocation17], %s4138_s3  ;;  %s5600_s1 = sshll.u32 %s3889_s15, 12 }
  0xdf   : > { %3241 = vmatpush3.bf16.msra.mxu1 %v4166_v5  ;;  %v483_v13 = vadd.f32 %v4176_v11, %v4173_v10  ;;  %v526_v16 = vld [vmem:[#allocation8 + $0x30] sm:$0xff]  ;;  %v527_v17 = vld [vmem:[#allocation8 + $0x38] sm:$0xff]  ;;  %v4199_v22 = vld [vmem:[%s4142_s18 + $0x28] sm:$0xff]  ;;  %s2455_s29 = sshll.u32 %s4692_s16, 4  ;;  %s5612_s25 = scalar_lea.hbm %s5756_s7, %s5600_s1  ;;  %s5614_s29 = int_to_ptr.vmem [resolvable:$true] %s2455_s29 }
  0xe0   : > { %3242 = vmatprep.subr.bf16.mxu1 %v3809_v0  ;;  %v4192_v19 = vld [vmem:[%s4142_s18 + $0x20] sm:$0xff]  ;;  %v4196_v21 = vpack.c.bf16 %v527_v17, %v526_v16  ;;  %v529_v24 = vld [vmem:[#allocation8 + $0x48] sm:$0xff]  ;;  %v530_v27 = vld [vmem:[#allocation8 + $0x50] sm:$0xff]  ;;  %s3658_s22 = scalar_lea.vmem %s5614_s29, 4096  ;;  %p5791_p9 = scmp.ne.s32.totalorder %s5781_s17, 0 }
  0xe1   : > { %v484_v18 = vadd.f32 %v483_v13, %v4179_v12  ;;  %v528_v23 = vld [vmem:[#allocation8 + $0x40] sm:$0xff]  ;;  %v4204_v26 = vld [vmem:[%s4142_s18 + $0x30] sm:$0xff]  ;;  %v531_v30 = vld [vmem:[#allocation8 + $0x58] sm:$0xff]  ;;  %p3659_p6 = scmp.ne.s32.totalorder %s5614_s29, %s3658_s22 }
  0xe2   : > { %v4208_v29 = vpack.c.bf16 %v529_v24, %v528_v23  ;;  %v4211_v31 = vld [vmem:[%s4142_s18 + $0x38] sm:$0xff]  ;;  %v4214_v32 = vld [vmem:[%s4142_s18 + $0x40] sm:$0xff]  ;;  %v607_v35 = vld [vmem:[#allocation10 + $0x8] sm:$0xff]  ;;  %v4225_v43 = vpack.c.bf16 %v531_v30, %v530_v27 }
  0xe3   : > { %3244 = vmatpush3.bf16.msra.mxu1 %v4169_v7  ;;  %v485_v20 = vadd.f32 %v484_v18, %v4187_v15  ;;  %v606_v34 = vld [vmem:[#allocation10] sm:$0xff]  ;;  %v608_v36 = vld [vmem:[#allocation10 + $0x10] sm:$0xff]  ;;  %v609_v39 = vld [vmem:[#allocation10 + $0x18] sm:$0xff]  ;;  %p3660_p4 = pnand %p3659_p6, %p5791_p9 }
  0xe4   : > { %3245 = vmatprep.subr.bf16.mxu1 %v3809_v0  ;;  %v4219_v37 = vld [vmem:[%s4142_s18 + $0x48] sm:$0xff]  ;;  %v4221_v38 = vpack.c.bf16 %v607_v35, %v606_v34  ;;  %v4228_v44 = vld [vmem:[%s4142_s18 + $0x50] sm:$0xff]  ;;  %v4235_v46 = vld [vmem:[%s4142_s18 + $0x58] sm:$0xff]  ;;  %v4237_v47 = vpack.c.bf16 %v609_v39, %v608_v36 }
  0xe5   : > { %v486_v25 = vadd.f32 %v485_v20, %v4192_v19  ;;  %v532_v40 = vld [vmem:[#allocation8 + $0x60] sm:$0xff]  ;;  %v533_v41 = vld [vmem:[#allocation8 + $0x68] sm:$0xff]  ;;  %v534_v48 = vld [vmem:[#allocation8 + $0x70] sm:$0xff]  ;;  %p3661_p13 = pneg %p3660_p4 }
  0xe6   : > { %3295 = vmatpush3.bf16.msra.mxu0 %v4221_v38  ;;  %v535_v49 = vld [vmem:[#allocation8 + $0x78] sm:$0xff]  ;;  %v4241_v51 = vpack.c.bf16 %v533_v41, %v532_v40  ;;  %v4250_v54 = vld [vmem:[%s4142_s18 + $0x68] sm:$0xff]  ;;  %v4259_v58 = vld [vmem:[%s4142_s18 + $0x70] sm:$0xff] }
  0xe7   : > { %3247 = vmatpush3.bf16.msra.mxu1 %v4184_v14  ;;  %v487_v28 = vadd.f32 %v486_v25, %v4199_v22  ;;  %3296 = vmatprep.subr.bf16.mxu0 %v3809_v0  ;;  %v4244_v52 = vld [vmem:[%s4142_s18 + $0x60] sm:$0xff]  ;;  %v4254_v56 = vpack.c.bf16 %v535_v49, %v534_v48  ;;  %v4264_v60 = vld [vmem:[%s4142_s18 + $0x78] sm:$0xff]  ;;  %v4273_v2 = vld [vmem:[%s4142_s18 + $0x88] sm:$0xff] }
  0xe8   : > { %3248 = vmatprep.subr.bf16.mxu1 %v3809_v0  ;;  %v4269_v62 = vld [vmem:[%s4142_s18 + $0x80] sm:$0xff]  ;;  %v4277_v4 = vld [vmem:[%s4142_s18 + $0x90] sm:$0xff]  ;;  %v4281_v8 = vld [vmem:[%s4142_s18 + $0x98] sm:$0xff] }
  0xe9   : > { %v488_v33 = vadd.f32 %v487_v28, %v4204_v26  ;;  %v4285_v13 = vld [vmem:[%s4142_s18 + $0xa0] sm:$0xff]  ;;  %v4289_v17 = vld [vmem:[%s4142_s18 + $0xa8] sm:$0xff]  ;;  %v4293_v20 = vld [vmem:[%s4142_s18 + $0xb0] sm:$0xff] }
  0xea   : > { %3298 = vmatpush3.bf16.msra.mxu0 %v4237_v47  ;;  %v4297_v24 = vld [vmem:[%s4142_s18 + $0xb8] sm:$0xff]  ;;  %v4301_v27 = vld [vmem:[%s4142_s18 + $0xc0] sm:$0xff]  ;;  %v4305_v30 = vld [vmem:[%s4142_s18 + $0xc8] sm:$0xff] }
  0xeb   : > { %3250 = vmatpush3.bf16.msra.mxu1 %v4196_v21  ;;  %v489_v42 = vadd.f32 %v488_v33, %v4211_v31  ;;  %v4309_v34 = vld [vmem:[%s4142_s18 + $0xd0] sm:$0xff]  ;;  %v4313_v36 = vld [vmem:[%s4142_s18 + $0xd8] sm:$0xff]  ;;  %v4317_v40 = vld [vmem:[%s4142_s18 + $0xe0] sm:$0xff] }
  0xec   : > { %3251 = vmatprep.subr.bf16.mxu1 %v3809_v0  ;;  %v4325_v48 = vld [vmem:[%s4142_s18 + $0xf0] sm:$0xff] }
  0xed   : > { %v490_v45 = vadd.f32 %v489_v42, %v4214_v32  ;;  %v4321_v42 = vld [vmem:[%s4142_s18 + $0xe8] sm:$0xff] }
  0xef   : > { %3253 = vmatpush3.bf16.msra.mxu1 %v4208_v29  ;;  %v491_v50 = vadd.f32 %v490_v45, %v4219_v37 }
  0xf0   : > { %3254 = vmatprep.subr.bf16.mxu1 %v3809_v0 }
  0xf1   : > { %v492_v53 = vadd.f32 %v491_v50, %v4228_v44  ;;  %v4329_v50 = vld [vmem:[%s4142_s18 + $0xf8] sm:$0xff]  ;;  %s3814_s18 = smov [#allocation14]  }
  0xf2   : > { %s3662_s9 = sshll.u32 %s3814_s18, 4  ;;  %s3663_s9 = int_to_ptr.vmem [resolvable:$false] %s3662_s9 }
  0xf3   : > { %3256 = vmatpush3.bf16.msra.mxu1 %v4225_v43  ;;  %v493_v55 = vadd.f32 %v492_v53, %v4235_v46  ;;  %s3664_s24 = scalar_lea.vmem %s3663_s9, 8192  ;;  %p3665_p1 = scmp.lt.s32.totalorder %s5614_s29, %s3663_s9 }
  0xf4   : > { %3257 = vmatprep.subr.bf16.mxu1 %v3809_v0  ;;  %p3666_p3 = scmp.lt.s32.totalorder %s3664_s24, %s3658_s22 }
  0xf5   : > { %v494_v57 = vadd.f32 %v493_v55, %v4244_v52 }
  0xf6   : > { %p3667_p2 = por %p3666_p3, %p3665_p1 }
  0xf7   : > { %3259 = vmatpush3.bf16.msra.mxu1 %v4241_v51  ;;  %v495_v59 = vadd.f32 %v494_v57, %v4250_v54 }
  0xf8   : > { %3260 = vmatprep.subr.bf16.mxu1 %v3809_v0  ;;  %p3668_p8 = pnand %p3667_p2, %p3661_p13 }
  0xf9   : > { %v496_v61 = vadd.f32 %v495_v59, %v4259_v58 }
  0xfb   : > { %3262 = vmatpush3.bf16.msra.mxu1 %v4254_v56  ;;  %v497_v63 = vadd.f32 %v496_v61, %v4264_v60 }
  0xfc   : > { %3263 = vmatprep.subr.bf16.mxu1 %v3809_v0 }
  0xfd   : > { %v498_v3 = vadd.f32 %v497_v63, %v4269_v62 }
  0xff   : > { %v499_v6 = vadd.f32 %v498_v3, %v4273_v2 }
 0x101   : > { %v500_v9 = vadd.f32 %v499_v6, %v4277_v4 }
 0x103   : > { %v501_v16 = vadd.f32 %v500_v9, %v4281_v8 }
 0x105   : > { %v502_v18 = vadd.f32 %v501_v16, %v4285_v13 }
 0x107   : > { %v503_v23 = vadd.f32 %v502_v18, %v4289_v17 }
 0x109   : > { %v504_v25 = vadd.f32 %v503_v23, %v4293_v20 }
 0x10b   : > { %v505_v28 = vadd.f32 %v504_v25, %v4297_v24 }
 0x10d   : > { %v506_v33 = vadd.f32 %v505_v28, %v4301_v27 }
 0x10f   : > { %v507_v35 = vadd.f32 %v506_v33, %v4305_v30 }
 0x111   : > { %v508_v39 = vadd.f32 %v507_v35, %v4309_v34 }
 0x113   : > { %v509_v41 = vadd.f32 %v508_v39, %v4313_v36 }
 0x115   : > { %v510_v45 = vadd.f32 %v509_v41, %v4317_v40 }
 0x117   : > { %v511_v49 = vadd.f32 %v510_v45, %v4321_v42 }
 0x119   : > { %v512_v53 = vadd.f32 %v511_v49, %v4325_v48 }
 0x11b   : > { %v513_v55 = vadd.f32 %v512_v53, %v4329_v50 }
 0x11d   : > { %v514_v57 = vrot.slane %v513_v55, 4 }
 0x11f   : > { %v515_v59 = vadd.f32 %v514_v57, %v513_v55 }
 0x121   : > { %v516_v61 = vrot.slane %v515_v59, 2 }
 0x123   : > { %v517_v63 = vadd.f32 %v516_v61, %v515_v59 }
 0x125   : > { %v518_v3 = vrot.slane %v517_v63, 1 }
 0x127   : > { %v519_v6 = vadd.f32 %v518_v3, %v517_v63 }
 0x129   : > { %3132 = vmatmul.mubr.f32.vlgmr.msra.gmra.mrb[0].mxu1 %v519_v6 }
 0x12a   : > { %3265 = vmatpush3.bf16.msra.mxu1 %v4221_v38  ;;  %3142 = vmatprep.mubr.msk.f32.mxu1 %vm3810_vm0, %v3811_v1 }
 0x12b   : > { %3266 = vmatprep.subr.bf16.mxu1 %v3809_v0 }
 0x12e   : > { %3268 = vmatpush3.bf16.msra.mxu1 %v4237_v47 }
 0x12f   : > { %3269 = vmatprep.subr.bf16.mxu1 %v3809_v0 }
 0x1fc   : > { %v602_v9 = vpop.f32.mrb[0].mxu1 }
 0x1fd   : > { %v3133_v16 = vpop.f32.mrb[1].mxu1  ;;  %3143 = vmatmul.mubr.msk.f32.vlgmr.msra.gmra.mrb[2].mxu1 %vm610_vm1, %v602_v9 }
 0x1fe   : > { %3271 = vmatpush3.bf16.msra.mxu1 %v4166_v5  ;;  %3177 = vmatprep.mubr.msk.f32.mxu1 %vm3810_vm0, %v3811_v1  ;;  %v686_v1 = vlaneseq }
 0x1ff   : > { %3272 = vmatprep.subr.bf16.mxu1 %v3809_v0 }
 0x202   : > { %3274 = vmatpush3.bf16.msra.mxu1 %v4169_v7  ;;  %v4357_v7 = vshrl.u32 %v686_v1, 7 }
 0x203   : > { %3275 = vmatprep.subr.bf16.mxu1 %v3809_v0 }
 0x206   : > { %3277 = vmatpush3.bf16.msra.mxu1 %v4184_v14 }
 0x207   : > { %3278 = vmatprep.subr.bf16.mxu1 %v3809_v0 }
 0x20a   : > { %3280 = vmatpush3.bf16.msra.mxu1 %v4196_v21 }
 0x20b   : > { %3281 = vmatprep.subr.bf16.mxu1 %v3809_v0 }
 0x20e   : > { %3283 = vmatpush3.bf16.msra.mxu1 %v4208_v29  ;;  %v4360_v29 = vsub.s32 0, %v4357_v7 }
 0x20f   : > { %3284 = vmatprep.subr.bf16.mxu1 %v3809_v0 }
 0x212   : > { %3286 = vmatpush3.bf16.msra.mxu1 %v4225_v43 }
 0x213   : > { %3287 = vmatprep.subr.bf16.mxu1 %v3809_v0 }
 0x216   : > { %3289 = vmatpush3.bf16.msra.mxu1 %v4241_v51 }
 0x217   : > { %3290 = vmatprep.subr.bf16.mxu1 %v3809_v0 }
 0x21a   : > { %3292 = vmatpush3.bf16.msra.mxu1 %v4254_v56 }
 0x2d0   : > { %v680_v5 = vpop.f32.mrb[2].mxu1 }
 0x2d1   : > { %v3144_v14 = vpop.f32.mrb[3].mxu1  ;;  %v685_v21 = vmul.f32 0.0009765625, %v680_v5 }
 0x2d3   : > { %v4363_v38 = vrot.slane %v685_v21, %v4360_v29 }
 0x2d5   : > { %v4367_v43 = vsub.f32 %v4173_v10, %v4363_v38  ;;  %v4371_v0 = vsub.f32 %v4176_v11, %v4363_v38  ;;  %v4375_v47 = vsub.f32 %v4179_v12, %v4363_v38  ;;  %v4383_v18 = vsub.f32 %v4187_v15, %v4363_v38 }
 0x2d6   : > { %v4387_v10 = vsub.f32 %v4192_v19, %v4363_v38  ;;  %v4393_v12 = vsub.f32 %v4199_v22, %v4363_v38  ;;  %v4399_v15 = vsub.f32 %v4204_v26, %v4363_v38  ;;  %v4405_v35 = vsub.f32 %v4211_v31, %v4363_v38 }
 0x2d7   : > { %v722_v51 = vmul.f32 %v4367_v43, %v4367_v43  ;;  %v723_v56 = vmul.f32 %v4371_v0, %v4371_v0  ;;  %v724_v11 = vmul.f32 %v4375_v47, %v4375_v47  ;;  %v725_v25 = vmul.f32 %v4383_v18, %v4383_v18 }
 0x2d8   : > { %v726_v19 = vmul.f32 %v4387_v10, %v4387_v10  ;;  %v727_v22 = vmul.f32 %v4393_v12, %v4393_v12  ;;  %v4411_v41 = vsub.f32 %v4214_v32, %v4363_v38  ;;  %v728_v26 = vmul.f32 %v4399_v15, %v4399_v15 }
 0x2d9   : > { %v754_v23 = vadd.f32 %v723_v56, %v722_v51  ;;  %v4417_v49 = vsub.f32 %v4219_v37, %v4363_v38  ;;  %v729_v31 = vmul.f32 %v4405_v35, %v4405_v35  ;;  %v4423_v55 = vsub.f32 %v4228_v44, %v4363_v38 }
 0x2da   : > { %v730_v32 = vmul.f32 %v4411_v41, %v4411_v41  ;;  %v4429_v59 = vsub.f32 %v4235_v46, %v4363_v38  ;;  %v4435_v63 = vsub.f32 %v4244_v52, %v4363_v38  ;;  %v4441_v6 = vsub.f32 %v4250_v54, %v4363_v38 }
 0x2db   : > { %v755_v28 = vadd.f32 %v754_v23, %v724_v11  ;;  %v731_v37 = vmul.f32 %v4417_v49, %v4417_v49  ;;  %v732_v44 = vmul.f32 %v4423_v55, %v4423_v55  ;;  %v4447_v16 = vsub.f32 %v4259_v58, %v4363_v38 }
 0x2dc   : > { %v733_v46 = vmul.f32 %v4429_v59, %v4429_v59  ;;  %v734_v52 = vmul.f32 %v4435_v63, %v4435_v63  ;;  %v4453_v5 = vsub.f32 %v4264_v60, %v4363_v38  ;;  %v735_v54 = vmul.f32 %v4441_v6, %v4441_v6 }
 0x2dd   : > { %v756_v33 = vadd.f32 %v755_v28, %v725_v25  ;;  %v4459_v21 = vsub.f32 %v4269_v62, %v4363_v38  ;;  %v736_v58 = vmul.f32 %v4447_v16, %v4447_v16  ;;  %v4465_v56 = vsub.f32 %v4273_v2, %v4363_v38 }
 0x2de   : > { %v737_v60 = vmul.f32 %v4453_v5, %v4453_v5  ;;  %v4471_v23 = vsub.f32 %v4277_v4, %v4363_v38  ;;  %v4477_v28 = vsub.f32 %v4281_v8, %v4363_v38 }
 0x2df   : > { %v757_v39 = vadd.f32 %v756_v33, %v726_v19  ;;  %v738_v62 = vmul.f32 %v4459_v21, %v4459_v21  ;;  %v739_v2 = vmul.f32 %v4465_v56, %v4465_v56  ;;  %v4483_v33 = vsub.f32 %v4285_v13, %v4363_v38 }
 0x2e0   : > { %v740_v4 = vmul.f32 %v4471_v23, %v4471_v23  ;;  %v741_v8 = vmul.f32 %v4477_v28, %v4477_v28 }
 0x2e1   : > { %v758_v45 = vadd.f32 %v757_v39, %v727_v22  ;;  %v4489_v39 = vsub.f32 %v4289_v17, %v4363_v38  ;;  %v742_v13 = vmul.f32 %v4483_v33, %v4483_v33 }
 0x2e3   : > { %v759_v53 = vadd.f32 %v758_v45, %v728_v26  ;;  %v4495_v45 = vsub.f32 %v4293_v20, %v4363_v38  ;;  %v743_v17 = vmul.f32 %v4489_v39, %v4489_v39 }
 0x2e5   : > { %v760_v57 = vadd.f32 %v759_v53, %v729_v31  ;;  %v4501_v53 = vsub.f32 %v4297_v24, %v4363_v38  ;;  %v744_v20 = vmul.f32 %v4495_v45, %v4495_v45 }
 0x2e7   : > { %v761_v61 = vadd.f32 %v760_v57, %v730_v32  ;;  %v4507_v57 = vsub.f32 %v4301_v27, %v4363_v38  ;;  %v745_v24 = vmul.f32 %v4501_v53, %v4501_v53 }
 0x2e9   : > { %v762_v3 = vadd.f32 %v761_v61, %v731_v37  ;;  %v4513_v61 = vsub.f32 %v4305_v30, %v4363_v38  ;;  %v746_v27 = vmul.f32 %v4507_v57, %v4507_v57 }
 0x2eb   : > { %v763_v9 = vadd.f32 %v762_v3, %v732_v44  ;;  %v4519_v3 = vsub.f32 %v4309_v34, %v4363_v38  ;;  %v747_v30 = vmul.f32 %v4513_v61, %v4513_v61 }
 0x2ed   : > { %v764_v1 = vadd.f32 %v763_v9, %v733_v46  ;;  %v4525_v9 = vsub.f32 %v4313_v36, %v4363_v38  ;;  %v748_v34 = vmul.f32 %v4519_v3, %v4519_v3 }
 0x2ef   : > { %v765_v14 = vadd.f32 %v764_v1, %v734_v52  ;;  %v4531_v1 = vsub.f32 %v4317_v40, %v4363_v38  ;;  %v749_v36 = vmul.f32 %v4525_v9, %v4525_v9 }
 0x2f1   : > { %v766_v51 = vadd.f32 %v765_v14, %v735_v54  ;;  %v4537_v14 = vsub.f32 %v4321_v42, %v4363_v38  ;;  %v750_v40 = vmul.f32 %v4531_v1, %v4531_v1 }
 0x2f3   : > { %v767_v11 = vadd.f32 %v766_v51, %v736_v58  ;;  %v4543_v51 = vsub.f32 %v4325_v48, %v4363_v38  ;;  %v751_v42 = vmul.f32 %v4537_v14, %v4537_v14 }
 0x2f5   : > { %v768_v25 = vadd.f32 %v767_v11, %v737_v60  ;;  %v4549_v11 = vsub.f32 %v4329_v50, %v4363_v38  ;;  %v3428_v38 = vld [vmem:[#allocation11 + $0x4] ss:$12 sps:$4 sm:$0xff]  }
 0x2f6   : > { %1209 = vmatprep.subr.bf16.mxu0 %v3428_v38 }
 0x2f7   : > { %v769_v19 = vadd.f32 %v768_v25, %v738_v62  ;;  %v752_v25 = vmul.f32 %v4543_v51, %v4543_v51  ;;  %v753_v48 = vmul.f32 %v4549_v11, %v4549_v11 }
 0x2f9   : > { %v770_v22 = vadd.f32 %v769_v19, %v739_v2 }
 0x2fb   : > { %v771_v26 = vadd.f32 %v770_v22, %v740_v4 }
 0x2fd   : > { %v772_v31 = vadd.f32 %v771_v26, %v741_v8 }
 0x2ff   : > { %v773_v32 = vadd.f32 %v772_v31, %v742_v13 }
 0x301   : > { %v774_v37 = vadd.f32 %v773_v32, %v743_v17  ;;  %v3429_v17 = vld [vmem:[#allocation11 + $0x8] ss:$12 sps:$4 sm:$0xff]   ;;  %v3433_v32 = vld [vmem:[#allocation11 + $0x20] ss:$12 sps:$4 sm:$0xff]  }
 0x302   : > { %3191 = vmatprep.subr.bf16.mxu1 %v3429_v17 }
 0x303   : > { %v775_v44 = vadd.f32 %v774_v37, %v744_v20  ;;  %v3426_v20 = vld [vmem:[#allocation11] ss:$12 sps:$4 sm:$0xff]   ;;  %v3432_v37 = vld [vmem:[#allocation11 + $0x1c] ss:$12 sps:$4 sm:$0xff]  }
 0x305   : > { %v776_v46 = vadd.f32 %v775_v44, %v745_v24 }
 0x307   : > { %v777_v52 = vadd.f32 %v776_v46, %v746_v27  ;;  %v3430_v27 = vld [vmem:[#allocation11 + $0x18] ss:$12 sps:$4 sm:$0xff]   ;;  %v3436_v46 = vld [vmem:[#allocation11 + $0x34] ss:$12 sps:$4 sm:$0xff]  }
 0x309   : > { %v778_v54 = vadd.f32 %v777_v52, %v747_v30  ;;  %v3434_v30 = vld [vmem:[#allocation11 + $0x30] ss:$12 sps:$4 sm:$0xff]   ;;  %v3437_v52 = vld [vmem:[#allocation11 + $0x38] ss:$12 sps:$4 sm:$0xff]  }
 0x30b   : > { %v779_v58 = vadd.f32 %v778_v54, %v748_v34  ;;  %v3440_v34 = vld [vmem:[#allocation11 + $0x4c] ss:$12 sps:$4 sm:$0xff]   ;;  %v3438_v54 = vld [vmem:[#allocation11 + $0x48] ss:$12 sps:$4 sm:$0xff]  }
 0x30d   : > { %v780_v60 = vadd.f32 %v779_v58, %v749_v36  ;;  %v3441_v36 = vld [vmem:[#allocation11 + $0x50] ss:$12 sps:$4 sm:$0xff]  }
 0x30e   : > { %v3444_v58 = vld [vmem:[#allocation11 + $0x64] ss:$12 sps:$4 sm:$0xff]  }
 0x30f   : > { %v781_v62 = vadd.f32 %v780_v60, %v750_v40  ;;  %v3442_v40 = vld [vmem:[#allocation11 + $0x60] ss:$12 sps:$4 sm:$0xff]   ;;  %v3445_v60 = vld [vmem:[#allocation11 + $0x68] ss:$12 sps:$4 sm:$0xff]  }
 0x311   : > { %v782_v2 = vadd.f32 %v781_v62, %v751_v42  ;;  %v3448_v42 = vld [vmem:[#allocation11 + $0x7c] ss:$12 sps:$4 sm:$0xff]   ;;  %v3446_v62 = vld [vmem:[#allocation11 + $0x78] ss:$12 sps:$4 sm:$0xff]  }
 0x313   : > { %v783_v19 = vadd.f32 %v782_v2, %v752_v25  ;;  %v3449_v25 = vld [vmem:[#allocation11 + $0x80] ss:$12 sps:$4 sm:$0xff]  }
 0x314   : > { %v3452_v2 = vld [vmem:[#allocation11 + $0x94] ss:$12 sps:$4 sm:$0xff]  }
 0x315   : > { %v784_v4 = vadd.f32 %v783_v19, %v753_v48  ;;  %v3450_v48 = vld [vmem:[#allocation11 + $0x90] ss:$12 sps:$4 sm:$0xff]   ;;  %v3453_v19 = vld [vmem:[#allocation11 + $0x98] ss:$12 sps:$4 sm:$0xff]  }
 0x317   : > { %v785_v22 = vrot.slane %v784_v4, 4 }
 0x319   : > { %v786_v8 = vadd.f32 %v785_v22, %v784_v4  ;;  %v3456_v4 = vld [vmem:[#allocation11 + $0xac] ss:$12 sps:$4 sm:$0xff]   ;;  %v3457_v22 = vld [vmem:[#allocation11 + $0xb0] ss:$12 sps:$4 sm:$0xff]  }
 0x31b   : > { %v787_v26 = vrot.slane %v786_v8, 2 }
 0x31d   : > { %v788_v13 = vadd.f32 %v787_v26, %v786_v8  ;;  %v3454_v8 = vld [vmem:[#allocation11 + $0xa8] ss:$12 sps:$4 sm:$0xff]   ;;  %v3812_v26 = vmov 0  }
 0x31f   : > { %v789_v31 = vrot.slane %v788_v13, 1 }
 0x321   : > { %v790_v50 = vadd.f32 %v789_v31, %v788_v13 }
 0x323   : > { %3178 = vmatmul.mubr.f32.vlgmr.msra.gmra.mrb[4].mxu1 %v790_v50 }
 0x324   : > { %3192 = vmatpush3.bf16.msra.mxu1 %v3429_v17  ;;  %v935_v17 = vld [vmem:[#allocation5] sm:$0x1] }
 0x325   : > { %3193 = vmatprep.subr.bf16.mxu1 %v3433_v32 }
 0x328   : > { %3194 = vmatpush3.bf16.msra.mxu1 %v3433_v32 }
 0x329   : > { %3195 = vmatprep.subr.bf16.mxu1 %v3437_v52 }
 0x32c   : > { %3196 = vmatpush3.bf16.msra.mxu1 %v3437_v52 }
 0x32d   : > { %3197 = vmatprep.subr.bf16.mxu1 %v3441_v36 }
 0x330   : > { %3198 = vmatpush3.bf16.msra.mxu1 %v3441_v36 }
 0x331   : > { %3199 = vmatprep.subr.bf16.mxu1 %v3445_v60 }
 0x334   : > { %3200 = vmatpush3.bf16.msra.mxu1 %v3445_v60 }
 0x335   : > { %3201 = vmatprep.subr.bf16.mxu1 %v3449_v25 }
 0x338   : > { %3202 = vmatpush3.bf16.msra.mxu1 %v3449_v25 }
 0x339   : > { %3203 = vmatprep.subr.bf16.mxu1 %v3453_v19 }
 0x33c   : > { %3204 = vmatpush3.bf16.msra.mxu1 %v3453_v19 }
 0x33d   : > { %3205 = vmatprep.subr.bf16.mxu1 %v3457_v22 }
 0x340   : > { %3206 = vmatpush3.bf16.msra.mxu1 %v3457_v22 }
 0x3f6   : > { %v857_v24 = vpop.f32.mrb[4].mxu1 }
 0x3f7   : > { %v3179_v44 = vpop.f32.mrb[5].mxu1  ;;  %3189 = vmatmul.mubr.msk.f32.vlgmr.msra.gmra.mrb[0].mxu0 %vm610_vm1, %v857_v24  ;;  %v4562_v24 = vld [vmem:[#allocation7] ss:$0 sm:$0xff] }
 0x3f8   : > { %1210 = vmatpush1.bf16.msra.mxu0 %v3426_v20  ;;  %1241 = vmatprep.mubr.bf16.mxu0 %v3812_v26 }
 0x3f9   : > { %1211 = vmatprep.subr.bf16.mxu0 %v3432_v37 }
 0x3fc   : > { %1212 = vmatpush1.bf16.msra.mxu0 %v3430_v27 }
 0x3fd   : > { %1213 = vmatprep.subr.bf16.mxu0 %v3436_v46 }
 0x400   : > { %1214 = vmatpush1.bf16.msra.mxu0 %v3434_v30 }
 0x401   : > { %1215 = vmatprep.subr.bf16.mxu0 %v3440_v34 }
 0x404   : > { %1216 = vmatpush1.bf16.msra.mxu0 %v3438_v54 }
 0x405   : > { %1217 = vmatprep.subr.bf16.mxu0 %v3444_v58 }
 0x408   : > { %1218 = vmatpush1.bf16.msra.mxu0 %v3442_v40 }
 0x409   : > { %1219 = vmatprep.subr.bf16.mxu0 %v3448_v42 }
 0x40c   : > { %1220 = vmatpush1.bf16.msra.mxu0 %v3446_v62 }
 0x40d   : > { %1221 = vmatprep.subr.bf16.mxu0 %v3452_v2 }
 0x410   : > { %1222 = vmatpush1.bf16.msra.mxu0 %v3450_v48 }
 0x411   : > { %1223 = vmatprep.subr.bf16.mxu0 %v3456_v4 }
 0x414   : > { %1224 = vmatpush1.bf16.msra.mxu0 %v3454_v8 }
 0x4ca   : > { %v930_v13 = vpop.f32.mrb[0].mxu0 }
 0x4cb   : > { %v934_v31 = vmul.f32 0.0009765625, %v930_v13  ;;  %v3190_v50 = vpop.f32.mrb[1].mxu0 }
 0x4cd   : > { %v936_v38 = vadd.f32 1e-06, %v934_v31 }
 0x4cf   : > { %3458 = vrsqrt.f32 %v936_v38 }
 0x4d9   : > { %v3459_v32 = vpop.eup %3458 }
 0x4da   : > { %v938_v20 = vmul.f32 %v3459_v32, %v935_v17 }
 0x4dc   : > { %v4560_v37 = vrot.slane %v938_v20, %v4360_v29 }
 0x4de   : > { %v945_v44 = vmul.f32 %v4560_v37, %v4367_v43  ;;  %v946_v27 = vmul.f32 %v4560_v37, %v4371_v0  ;;  %v947_v46 = vmul.f32 %v4560_v37, %v4375_v47  ;;  %v948_v30 = vmul.f32 %v4560_v37, %v4383_v18 }
 0x4df   : > { %v949_v52 = vmul.f32 %v4560_v37, %v4387_v10  ;;  %v950_v34 = vmul.f32 %v4560_v37, %v4393_v12  ;;  %v951_v10 = vmul.f32 %v4560_v37, %v4399_v15  ;;  %v952_v12 = vmul.f32 %v4560_v37, %v4405_v35 }
 0x4e0   : > { %v984_v54 = vadd.f32 %v4562_v24, %v945_v44  ;;  %v985_v36 = vadd.f32 %v4562_v24, %v946_v27  ;;  %v986_v43 = vadd.f32 %v4562_v24, %v947_v46  ;;  %v987_v0 = vadd.f32 %v4562_v24, %v948_v30 }
 0x4e1   : > { %v988_v58 = vadd.f32 %v4562_v24, %v949_v52  ;;  %v989_v47 = vadd.f32 %v4562_v24, %v950_v34  ;;  %v953_v42 = vmul.f32 %v4560_v37, %v4411_v41  ;;  %v954_v62 = vmul.f32 %v4560_v37, %v4417_v49 }
 0x4e2   : > { %v1016_v40 = vpack.c.bf16 %v985_v36, %v984_v54  ;;  %v1017_v18 = vpack.c.bf16 %v987_v0, %v986_v43  ;;  %v990_v25 = vadd.f32 %v4562_v24, %v951_v10  ;;  %v991_v15 = vadd.f32 %v4562_v24, %v952_v12 }
 0x4e3   : > { %v1018_v60 = vpack.c.bf16 %v989_v47, %v988_v58  ;;  %v992_v2 = vadd.f32 %v4562_v24, %v953_v42  ;;  %v993_v35 = vadd.f32 %v4562_v24, %v954_v62  ;;  %v955_v19 = vmul.f32 %v4560_v37, %v4423_v55 }
 0x4e4   : > { %1242 = vmatmul.mubr.bf16.vlgmr.msra.gmra.mrb[4].mxu0 %v1016_v40  ;;  %3207 = vmatprep.mubr.bf16.mxu1 %v1016_v40  ;;  %v1019_v48 = vpack.c.bf16 %v991_v15, %v990_v25  ;;  %v956_v41 = vmul.f32 %v4560_v37, %v4429_v59  ;;  %v957_v4 = vmul.f32 %v4560_v37, %v4435_v63 }
 0x4e5   : > { %3208 = vmatmul.mubr.bf16.vlgmr.msra.gmra.mrb[8].mxu1 %v1017_v18  ;;  %1251 = vmatprep.mubr.bf16.mxu0 %v3812_v26  ;;  %v1020_v49 = vpack.c.bf16 %v993_v35, %v992_v2  ;;  %v958_v22 = vmul.f32 %v4560_v37, %v4441_v6  ;;  %v994_v8 = vadd.f32 %v4562_v24, %v955_v19 }
 0x4e6   : > { %3211 = vmatprep.mubr.bf16.mxu1 %v1018_v60  ;;  %v995_v13 = vadd.f32 %v4562_v24, %v956_v41  ;;  %v996_v55 = vadd.f32 %v4562_v24, %v957_v4  ;;  %v959_v50 = vmul.f32 %v4560_v37, %v4447_v16  ;;  %v960_v63 = vmul.f32 %v4560_v37, %v4453_v5 }
 0x4e7   : > { %v997_v59 = vadd.f32 %v4562_v24, %v958_v22  ;;  %v961_v38 = vmul.f32 %v4560_v37, %v4459_v21  ;;  %v962_v17 = vmul.f32 %v4560_v37, %v4465_v56  ;;  %v963_v27 = vmul.f32 %v4560_v37, %v4471_v23 }
 0x4e8   : > { %v1021_v31 = vpack.c.bf16 %v995_v13, %v994_v8  ;;  %v998_v32 = vadd.f32 %v4562_v24, %v959_v50  ;;  %v999_v20 = vadd.f32 %v4562_v24, %v960_v63  ;;  %v964_v21 = vmul.f32 %v4560_v37, %v4477_v28 }
 0x4e9   : > { %v1022_v6 = vpack.c.bf16 %v997_v59, %v996_v55  ;;  %v1000_v16 = vadd.f32 %v4562_v24, %v961_v38  ;;  %v1001_v5 = vadd.f32 %v4562_v24, %v962_v17  ;;  %v965_v46 = vmul.f32 %v4560_v37, %v4483_v33 }
 0x4ea   : > { %v1023_v44 = vpack.c.bf16 %v999_v20, %v998_v32  ;;  %v966_v30 = vmul.f32 %v4560_v37, %v4489_v39  ;;  %v1002_v52 = vadd.f32 %v4562_v24, %v963_v27  ;;  %v1003_v34 = vadd.f32 %v4562_v24, %v964_v21 }
 0x4eb   : > { %v1024_v56 = vpack.c.bf16 %v1001_v5, %v1000_v16  ;;  %v1004_v23 = vadd.f32 %v4562_v24, %v965_v46  ;;  %v967_v36 = vmul.f32 %v4560_v37, %v4495_v45  ;;  %v968_v33 = vmul.f32 %v4560_v37, %v4501_v53 }
 0x4ec   : > { %1252 = vmatmul.mubr.bf16.gmra.mrb[8].mxu0 %v1017_v18  ;;  %v1005_v28 = vadd.f32 %v4562_v24, %v966_v30  ;;  %v1025_v54 = vpack.c.bf16 %v1003_v34, %v1002_v52  ;;  %v969_v43 = vmul.f32 %v4560_v37, %v4507_v57  ;;  %v970_v0 = vmul.f32 %v4560_v37, %v4513_v61 }
 0x4ed   : > { %3212 = vmatmul.mubr.bf16.gmra.mrb[12].mxu1 %v1019_v48  ;;  %1261 = vmatprep.mubr.bf16.mxu0 %v3812_v26  ;;  %v1006_v58 = vadd.f32 %v4562_v24, %v967_v36  ;;  %v1007_v47 = vadd.f32 %v4562_v24, %v968_v33  ;;  %v971_v18 = vmul.f32 %v4560_v37, %v4519_v3 }
 0x4ee   : > { %3215 = vmatprep.mubr.bf16.mxu1 %v1020_v49  ;;  %v1026_v39 = vpack.c.bf16 %v1005_v28, %v1004_v23  ;;  %v1008_v45 = vadd.f32 %v4562_v24, %v969_v43  ;;  %v1009_v53 = vadd.f32 %v4562_v24, %v970_v0  ;;  %v972_v57 = vmul.f32 %v4560_v37, %v4525_v9 }
 0x4ef   : > { %v1027_v40 = vpack.c.bf16 %v1007_v47, %v1006_v58  ;;  %v973_v10 = vmul.f32 %v4560_v37, %v4531_v1  ;;  %v974_v12 = vmul.f32 %v4560_v37, %v4537_v14  ;;  %v975_v25 = vmul.f32 %v4560_v37, %v4543_v51  ;;  %v1064_v51 = vld [vmem:[#allocation13] sm:$0x7] }
 0x4f0   : > { %v1028_v61 = vpack.c.bf16 %v1009_v53, %v1008_v45  ;;  %v1011_v42 = vadd.f32 %v4562_v24, %v972_v57  ;;  %v976_v1 = vmul.f32 %v4560_v37, %v4549_v11  ;;  %v1072_v11 = vsub.s32 1, %v4357_v7 }
 0x4f1   : > { %v1012_v3 = vadd.f32 %v4562_v24, %v973_v10  ;;  %v1013_v9 = vadd.f32 %v4562_v24, %v974_v12  ;;  %v1014_v15 = vadd.f32 %v4562_v24, %v975_v25  ;;  %v1076_v37 = vsub.s32 2, %v4357_v7 }
 0x4f2   : > { %v1015_v2 = vadd.f32 %v4562_v24, %v976_v1 }
 0x4f3   : > { %v1030_v14 = vpack.c.bf16 %v1013_v9, %v1012_v3  ;;  %v4682_v19 = vrot.slane %v1064_v51, %v1076_v37 }
 0x4f4   : > { %1262 = vmatmul.mubr.bf16.gmra.mrb[12].mxu0 %v1018_v60  ;;  %v1010_v60 = vadd.f32 %v4562_v24, %v971_v18  ;;  %v1031_v35 = vpack.c.bf16 %v1015_v2, %v1014_v15  ;;  %v4678_v24 = vrot.slane %v1064_v51, %v4360_v29 }
 0x4f5   : > { %3216 = vmatmul.mubr.bf16.gmra.mrb[16].mxu1 %v1021_v31  ;;  %1271 = vmatprep.mubr.bf16.mxu0 %v3812_v26 }
 0x4f6   : > { %3219 = vmatprep.mubr.bf16.mxu1 %v1022_v6  ;;  %v1029_v62 = vpack.c.bf16 %v1011_v42, %v1010_v60 }
 0x4fc   : > { %1272 = vmatmul.mubr.bf16.gmra.mrb[16].mxu0 %v1019_v48  ;;  %v4680_v48 = vrot.slane %v1064_v51, %v1072_v11 }
 0x4fd   : > { %3220 = vmatmul.mubr.bf16.gmra.mrb[20].mxu1 %v1023_v44  ;;  %1281 = vmatprep.mubr.bf16.mxu0 %v3812_v26 }
 0x4fe   : > { %3223 = vmatprep.mubr.bf16.mxu1 %v1024_v56 }
 0x504   : > { %1282 = vmatmul.mubr.bf16.gmra.mrb[20].mxu0 %v1020_v49 }
 0x505   : > { %3224 = vmatmul.mubr.bf16.gmra.mrb[24].mxu1 %v1025_v54  ;;  %1291 = vmatprep.mubr.bf16.mxu0 %v3812_v26 }
 0x506   : > { %3227 = vmatprep.mubr.bf16.mxu1 %v1026_v39 }
 0x50c   : > { %1292 = vmatmul.mubr.bf16.gmra.mrb[24].mxu0 %v1021_v31 }
 0x50d   : > { %3228 = vmatmul.mubr.bf16.gmra.mrb[28].mxu1 %v1027_v40  ;;  %1301 = vmatprep.mubr.bf16.mxu0 %v3812_v26 }
 0x50e   : > { %3231 = vmatprep.mubr.bf16.mxu1 %v1028_v61 }
 0x514   : > { %1302 = vmatmul.mubr.bf16.gmra.mrb[28].mxu0 %v1022_v6 }
 0x515   : > { %3232 = vmatmul.mubr.bf16.gmra.mrb[32].mxu1 %v1029_v62  ;;  %1311 = vmatprep.mubr.bf16.mxu0 %v3812_v26 }
 0x516   : > { %3235 = vmatprep.mubr.bf16.mxu1 %v1030_v14 }
 0x51c   : > { %1312 = vmatmul.mubr.bf16.gmra.mrb[32].mxu0 %v1023_v44 }
 0x51d   : > { %3236 = vmatmul.mubr.bf16.gmra.mrb[36].mxu1 %v1031_v35  ;;  %1321 = vmatprep.mubr.bf16.mxu0 %v3812_v26 }
 0x524   : > { %1322 = vmatmul.mubr.bf16.gmra.mrb[36].mxu0 %v1024_v56 }
 0x525   : > { %1331 = vmatprep.mubr.bf16.mxu0 %v3812_v26 }
 0x52c   : > { %1332 = vmatmul.mubr.bf16.gmra.mrb[40].mxu0 %v1025_v54 }
 0x52d   : > { %1341 = vmatprep.mubr.bf16.mxu0 %v3812_v26 }
 0x534   : > { %1342 = vmatmul.mubr.bf16.gmra.mrb[44].mxu0 %v1026_v39 }
 0x535   : > { %1351 = vmatprep.mubr.bf16.mxu0 %v3812_v26 }
 0x53c   : > { %1352 = vmatmul.mubr.bf16.gmra.mrb[48].mxu0 %v1027_v40 }
 0x53d   : > { %1361 = vmatprep.mubr.bf16.mxu0 %v3812_v26 }
 0x544   : > { %1362 = vmatmul.mubr.bf16.gmra.mrb[52].mxu0 %v1028_v61 }
 0x545   : > { %1371 = vmatprep.mubr.bf16.mxu0 %v3812_v26 }
 0x54c   : > { %1372 = vmatmul.mubr.bf16.gmra.mrb[56].mxu0 %v1029_v62 }
 0x54d   : > { %1381 = vmatprep.mubr.bf16.mxu0 %v3812_v26 }
 0x554   : > { %1382 = vmatmul.mubr.bf16.gmra.mrb[60].mxu0 %v1030_v14 }
 0x555   : > { %1391 = vmatprep.mubr.bf16.mxu0 %v3812_v26 }
 0x55c   : > { %1392 = vmatmul.mubr.bf16.gmra.mrb[64].mxu0 %v1031_v35 }
 0x5b7   : > { %v1243_v41 = vpop.f32.mrb[4].mxu0 }
 0x5b8   : > { %v1244_v49 = vadd.f32 %v1243_v41, %v4678_v24  ;;  %v1245_v4 = vpop.f32.mrb[5].mxu0  ;;  %v3209_v22 = vpop.f32.mrb[8].mxu1 }
 0x5b9   : > { %v1246_v26 = vadd.f32 %v1245_v4, %v4680_v48  ;;  %v1445_v8 = vadd.f32 %v3209_v22, %v4682_v19  ;;  %v1247_v13 = vpop.f32.mrb[6].mxu0  ;;  %v1436_v7 = vpop.f32.mrb[9].mxu1 }
 0x5ba   : > { %v2932_v55 = vpack.c.bf16 %v1244_v49, %v1244_v49  ;;  %v1248_v29 = vadd.f32 %v1247_v13, %v4678_v24  ;;  %v1437_v59 = vadd.f32 %v1436_v7, %v4682_v19  ;;  %v1249_v31 = vpop.f32.mrb[7].mxu0  ;;  %v3210_v50 = vpop.f32.mrb[10].mxu1 }
 0x5bb   : > { %v2964_v63 = vpack.c.bf16 %v1246_v26, %v1246_v26  ;;  %v2998_v6 = vpack.c.bf16 %v1445_v8, %v1445_v8  ;;  %v1250_v38 = vadd.f32 %v1249_v31, %v4680_v48  ;;  %v1448_v17 = vadd.f32 %v3210_v50, %v4682_v19  ;;  %v1439_v32 = vpop.f32.mrb[11].mxu1 }
 0x5bc   : > { %1724 = vst.msk [vmem:[%s4692_s16] sm:$0xf] %vm1723_vm2, %v2932_v55  ;;  %v2933_v20 = vpack.c.bf16 %v1248_v29, %v1248_v29  ;;  %v4696_v16 = vpack.c.bf16 %v1437_v59, %v1437_v59  ;;  %v1440_v5 = vadd.f32 %v1439_v32, %v4682_v19  ;;  %2044 = vrot.lane.b32.xlu0 %v2932_v55, %s3813_s28 }
 0x5bd   : > { %1868 = vst.msk [vmem:[%s4701_s14] sm:$0xf] %vm1723_vm2, %v2964_v63  ;;  %2014 = vst.msk [vmem:[%s4706_s19 + $0x8] sm:$0xf] %vm1723_vm2, %v2998_v6  ;;  %v2965_v44 = vpack.c.bf16 %v1250_v38, %v1250_v38  ;;  %v2999_v27 = vpack.c.bf16 %v1448_v17, %v1448_v17 }
 0x5be   : > { %1725 = vst.msk [vmem:[%s4692_s16 + $0x4] sm:$0xf] %vm1723_vm2, %v2933_v20  ;;  %2012 = vst.msk [vmem:[%s4706_s19] sm:$0xf] %vm1723_vm2, %v4696_v16  ;;  %v2997_v21 = vpack.c.bf16 %v1440_v5, %v1440_v5 }
 0x5bf   : > { %1869 = vst.msk [vmem:[%s4701_s14 + $0x4] sm:$0xf] %vm1723_vm2, %v2965_v44  ;;  %2015 = vst.msk [vmem:[%s4706_s19 + $0xc] sm:$0xf] %vm1723_vm2, %v2999_v27  ;;  %v1253_v56 = vpop.f32.mrb[8].mxu0  ;;  %2175 = vrot.lane.b32.xlu1 %v2965_v44, %s3813_s28 }
 0x5c0   : > { %2013 = vst.msk [vmem:[%s4706_s19 + $0x4] sm:$0xf] %vm1723_vm2, %v2997_v21  ;;  %v1254_v46 = vadd.f32 %v1253_v56, %v4678_v24  ;;  %v1255_v30 = vpop.f32.mrb[9].mxu0  ;;  %2173 = vrot.lane.b32.xlu0 %v2964_v63, %s3813_s28  ;;  %v3213_v52 = vpop.f32.mrb[12].mxu1 }
 0x5c1   : > { %v1256_v34 = vadd.f32 %v1255_v30, %v4680_v48  ;;  %v1461_v23 = vadd.f32 %v3213_v52, %v4682_v19  ;;  %v1257_v28 = vpop.f32.mrb[10].mxu0  ;;  %v1452_v54 = vpop.f32.mrb[13].mxu1 }
 0x5c2   : > { %v2934_v36 = vpack.c.bf16 %v1254_v46, %v1254_v46  ;;  %v1258_v33 = vadd.f32 %v1257_v28, %v4678_v24  ;;  %v1453_v39 = vadd.f32 %v1452_v54, %v4682_v19  ;;  %v1259_v43 = vpop.f32.mrb[11].mxu0  ;;  %v3214_v0 = vpop.f32.mrb[14].mxu1 }
 0x5c3   : > { %v2966_v58 = vpack.c.bf16 %v1256_v34, %v1256_v34  ;;  %v4728_v47 = vpack.c.bf16 %v1461_v23, %v1461_v23  ;;  %v1260_v45 = vadd.f32 %v1259_v43, %v4680_v48  ;;  %v1464_v53 = vadd.f32 %v3214_v0, %v4682_v19  ;;  %2308 = vrot.lane.b32.xlu1 %v2999_v27, %s3813_s28  ;;  %v1455_v40 = vpop.f32.mrb[15].mxu1 }
 0x5c4   : > { %1726 = vst.msk [vmem:[%s4692_s16 + $0x8] sm:$0xf] %vm1723_vm2, %v2934_v36  ;;  %v2935_v18 = vpack.c.bf16 %v1258_v33, %v1258_v33  ;;  %v4735_v57 = vpack.c.bf16 %v1453_v39, %v1453_v39  ;;  %v1456_v61 = vadd.f32 %v1455_v40, %v4682_v19  ;;  %2306 = vrot.lane.b32.xlu0 %v2998_v6, %s3813_s28 }
 0x5c5   : > { %1870 = vst.msk [vmem:[%s4701_s14 + $0x8] sm:$0xf] %vm1723_vm2, %v2966_v58  ;;  %2018 = vst.msk [vmem:[%s4706_s19 + $0x18] sm:$0xf] %vm1723_vm2, %v4728_v47  ;;  %v4744_v10 = vpack.c.bf16 %v1260_v45, %v1260_v45  ;;  %v4746_v12 = vpack.c.bf16 %v1464_v53, %v1464_v53 }
 0x5c6   : > { %1727 = vst.msk [vmem:[%s4692_s16 + $0xc] sm:$0xf] %vm1723_vm2, %v2935_v18  ;;  %2016 = vst.msk [vmem:[%s4706_s19 + $0x10] sm:$0xf] %vm1723_vm2, %v4735_v57  ;;  %v4753_v60 = vpack.c.bf16 %v1456_v61, %v1456_v61 }
 0x5c7   : > { %1871 = vst.msk [vmem:[%s4701_s14 + $0xc] sm:$0xf] %vm1723_vm2, %v4744_v10  ;;  %2019 = vst.msk [vmem:[%s4706_s19 + $0x1c] sm:$0xf] %vm1723_vm2, %v4746_v12  ;;  %v1263_v42 = vpop.f32.mrb[12].mxu0  ;;  %2304 = vrot.lane.b32.xlu1 %v2997_v21, %s3813_s28 }
 0x5c8   : > { %2017 = vst.msk [vmem:[%s4706_s19 + $0x14] sm:$0xf] %vm1723_vm2, %v4753_v60  ;;  %v1264_v3 = vadd.f32 %v1263_v42, %v4678_v24  ;;  %v1265_v9 = vpop.f32.mrb[13].mxu0  ;;  %2046 = vrot.lane.b32.xlu0 %v2933_v20, %s3813_s28  ;;  %v3217_v62 = vpop.f32.mrb[16].mxu1 }
 0x5c9   : > { %v1266_v25 = vadd.f32 %v1265_v9, %v4680_v48  ;;  %v1477_v1 = vadd.f32 %v3217_v62, %v4682_v19  ;;  %v1267_v14 = vpop.f32.mrb[14].mxu0  ;;  %v1468_v15 = vpop.f32.mrb[17].mxu1 }
 0x5ca   : > { %v4769_v2 = vpack.c.bf16 %v1264_v3, %v1264_v3  ;;  %v1268_v35 = vadd.f32 %v1267_v14, %v4678_v24  ;;  %v1469_v51 = vadd.f32 %v1468_v15, %v4682_v19  ;;  %v1269_v11 = vpop.f32.mrb[15].mxu0  ;;  %v3218_v37 = vpop.f32.mrb[18].mxu1 }
 0x5cb   : > { %v4773_v41 = vpack.c.bf16 %v1266_v25, %v1266_v25  ;;  %v4775_v49 = vpack.c.bf16 %v1477_v1, %v1477_v1  ;;  %v1270_v4 = vadd.f32 %v1269_v11, %v4680_v48  ;;  %v1480_v22 = vadd.f32 %v3218_v37, %v4682_v19  ;;  %v1471_v26 = vpop.f32.mrb[19].mxu1  ;;  %2048 = vrot.lane.b32.xlu1 %v2934_v36, %s3813_s28 }
 0x5cc   : > { %1728 = vst.msk [vmem:[%s4692_s16 + $0x10] sm:$0xf] %vm1723_vm2, %v4769_v2  ;;  %v4783_v8 = vpack.c.bf16 %v1268_v35, %v1268_v35  ;;  %v4785_v13 = vpack.c.bf16 %v1469_v51, %v1469_v51  ;;  %v1472_v7 = vadd.f32 %v1471_v26, %v4682_v19  ;;  %2302 = vrot.lane.b32.xlu0 %v4696_v16, %s3813_s28 }
 0x5cd   : > { %1872 = vst.msk [vmem:[%s4701_s14 + $0x10] sm:$0xf] %vm1723_vm2, %v4773_v41  ;;  %2022 = vst.msk [vmem:[%s4706_s19 + $0x28] sm:$0xf] %vm1723_vm2, %v4775_v49  ;;  %v4796_v55 = vpack.c.bf16 %v1270_v4, %v1270_v4  ;;  %v4798_v29 = vpack.c.bf16 %v1480_v22, %v1480_v22 }
 0x5ce   : > { %1729 = vst.msk [vmem:[%s4692_s16 + $0x14] sm:$0xf] %vm1723_vm2, %v4783_v8  ;;  %2020 = vst.msk [vmem:[%s4706_s19 + $0x20] sm:$0xf] %vm1723_vm2, %v4785_v13  ;;  %v4806_v59 = vpack.c.bf16 %v1472_v7, %v1472_v7 }
 0x5cf   : > { %1873 = vst.msk [vmem:[%s4701_s14 + $0x14] sm:$0xf] %vm1723_vm2, %v4796_v55  ;;  %2023 = vst.msk [vmem:[%s4706_s19 + $0x2c] sm:$0xf] %vm1723_vm2, %v4798_v29  ;;  %v1273_v31 = vpop.f32.mrb[16].mxu0  ;;  %2050 = vrot.lane.b32.xlu1 %v2935_v18, %s3813_s28 }
 0x5d0   : > { %2021 = vst.msk [vmem:[%s4706_s19 + $0x24] sm:$0xf] %vm1723_vm2, %v4806_v59  ;;  %v1274_v50 = vadd.f32 %v1273_v31, %v4678_v24  ;;  %v1275_v63 = vpop.f32.mrb[17].mxu0  ;;  %v3221_v6 = vpop.f32.mrb[20].mxu1  ;;  %2177 = vrot.lane.b32.xlu0 %v2966_v58, %s3813_s28 }
 0x5d1   : > { %v1276_v38 = vadd.f32 %v1275_v63, %v4680_v48  ;;  %v1493_v17 = vadd.f32 %v3221_v6, %v4682_v19  ;;  %v1277_v32 = vpop.f32.mrb[18].mxu0  ;;  %v1484_v20 = vpop.f32.mrb[21].mxu1 }
 0x5d2   : > { %v4822_v16 = vpack.c.bf16 %v1274_v50, %v1274_v50  ;;  %v1278_v5 = vadd.f32 %v1277_v32, %v4678_v24  ;;  %v1485_v44 = vadd.f32 %v1484_v20, %v4682_v19  ;;  %v1279_v27 = vpop.f32.mrb[19].mxu0  ;;  %v3222_v21 = vpop.f32.mrb[22].mxu1 }
 0x5d3   : > { %v4826_v56 = vpack.c.bf16 %v1276_v38, %v1276_v38  ;;  %v4828_v46 = vpack.c.bf16 %v1493_v17, %v1493_v17  ;;  %v1280_v30 = vadd.f32 %v1279_v27, %v4680_v48  ;;  %v1496_v52 = vadd.f32 %v3222_v21, %v4682_v19  ;;  %v1487_v34 = vpop.f32.mrb[23].mxu1  ;;  %2179 = vrot.lane.b32.xlu1 %v4744_v10, %s3813_s28 }
 0x5d4   : > { %1730 = vst.msk [vmem:[%s4692_s16 + $0x18] sm:$0xf] %vm1723_vm2, %v4822_v16  ;;  %v4837_v23 = vpack.c.bf16 %v1278_v5, %v1278_v5  ;;  %v4839_v28 = vpack.c.bf16 %v1485_v44, %v1485_v44  ;;  %v1488_v54 = vadd.f32 %v1487_v34, %v4682_v19  ;;  %2314 = vrot.lane.b32.xlu0 %v4728_v47, %s3813_s28 }
 0x5d5   : > { %1874 = vst.msk [vmem:[%s4701_s14 + $0x18] sm:$0xf] %vm1723_vm2, %v4826_v56  ;;  %2026 = vst.msk [vmem:[%s4706_s19 + $0x38] sm:$0xf] %vm1723_vm2, %v4828_v46  ;;  %v4850_v36 = vpack.c.bf16 %v1280_v30, %v1280_v30  ;;  %v4852_v33 = vpack.c.bf16 %v1496_v52, %v1496_v52 }
 0x5d6   : > { %1731 = vst.msk [vmem:[%s4692_s16 + $0x1c] sm:$0xf] %vm1723_vm2, %v4837_v23  ;;  %2024 = vst.msk [vmem:[%s4706_s19 + $0x30] sm:$0xf] %vm1723_vm2, %v4839_v28  ;;  %v4860_v39 = vpack.c.bf16 %v1488_v54, %v1488_v54 }
 0x5d7   : > { %1875 = vst.msk [vmem:[%s4701_s14 + $0x1c] sm:$0xf] %vm1723_vm2, %v4850_v36  ;;  %2027 = vst.msk [vmem:[%s4706_s19 + $0x3c] sm:$0xf] %vm1723_vm2, %v4852_v33  ;;  %v1283_v43 = vpop.f32.mrb[20].mxu0  ;;  %2316 = vrot.lane.b32.xlu1 %v4746_v12, %s3813_s28 }
 0x5d8   : > { %2025 = vst.msk [vmem:[%s4706_s19 + $0x34] sm:$0xf] %vm1723_vm2, %v4860_v39  ;;  %v1284_v0 = vadd.f32 %v1283_v43, %v4678_v24  ;;  %v1285_v58 = vpop.f32.mrb[21].mxu0  ;;  %v3225_v47 = vpop.f32.mrb[24].mxu1  ;;  %2310 = vrot.lane.b32.xlu0 %v4735_v57, %s3813_s28 }
 0x5d9   : > { %v1286_v45 = vadd.f32 %v1285_v58, %v4680_v48  ;;  %v1509_v53 = vadd.f32 %v3225_v47, %v4682_v19  ;;  %v1287_v40 = vpop.f32.mrb[22].mxu0  ;;  %v1500_v18 = vpop.f32.mrb[25].mxu1 }
 0x5da   : > { %v4878_v61 = vpack.c.bf16 %v1284_v0, %v1284_v0  ;;  %v1288_v10 = vadd.f32 %v1287_v40, %v4678_v24  ;;  %v1501_v12 = vadd.f32 %v1500_v18, %v4682_v19  ;;  %v1289_v42 = vpop.f32.mrb[23].mxu0  ;;  %v3226_v3 = vpop.f32.mrb[26].mxu1 }
 0x5db   : > { %v4882_v9 = vpack.c.bf16 %v1286_v45, %v1286_v45  ;;  %v4884_v57 = vpack.c.bf16 %v1509_v53, %v1509_v53  ;;  %v1290_v62 = vadd.f32 %v1289_v42, %v4680_v48  ;;  %v1512_v25 = vadd.f32 %v3226_v3, %v4682_v19  ;;  %v1503_v1 = vpop.f32.mrb[27].mxu1  ;;  %2312 = vrot.lane.b32.xlu1 %v4753_v60, %s3813_s28 }
 0x5dc   : > { %1732 = vst.msk [vmem:[%s4692_s16 + $0x20] sm:$0xf] %vm1723_vm2, %v4878_v61  ;;  %v4893_v14 = vpack.c.bf16 %v1288_v10, %v1288_v10  ;;  %v4895_v15 = vpack.c.bf16 %v1501_v12, %v1501_v12  ;;  %v1504_v35 = vadd.f32 %v1503_v1, %v4682_v19  ;;  %2052 = vrot.lane.b32.xlu0 %v4769_v2, %s3813_s28 }
 0x5dd   : > { %1876 = vst.msk [vmem:[%s4701_s14 + $0x20] sm:$0xf] %vm1723_vm2, %v4882_v9  ;;  %2030 = vst.msk [vmem:[%s4706_s19 + $0x48] sm:$0xf] %vm1723_vm2, %v4884_v57  ;;  %v4906_v60 = vpack.c.bf16 %v1290_v62, %v1290_v62  ;;  %v4908_v51 = vpack.c.bf16 %v1512_v25, %v1512_v25 }
 0x5de   : > { %1733 = vst.msk [vmem:[%s4692_s16 + $0x24] sm:$0xf] %vm1723_vm2, %v4893_v14  ;;  %2028 = vst.msk [vmem:[%s4706_s19 + $0x40] sm:$0xf] %vm1723_vm2, %v4895_v15  ;;  %v4916_v11 = vpack.c.bf16 %v1504_v35, %v1504_v35 }
 0x5df   : > { %1877 = vst.msk [vmem:[%s4701_s14 + $0x24] sm:$0xf] %vm1723_vm2, %v4906_v60  ;;  %2031 = vst.msk [vmem:[%s4706_s19 + $0x4c] sm:$0xf] %vm1723_vm2, %v4908_v51  ;;  %v1293_v2 = vpop.f32.mrb[24].mxu0  ;;  %2054 = vrot.lane.b32.xlu1 %v4783_v8, %s3813_s28 }
 0x5e0   : > { %2029 = vst.msk [vmem:[%s4706_s19 + $0x44] sm:$0xf] %vm1723_vm2, %v4916_v11  ;;  %v1294_v37 = vadd.f32 %v1293_v2, %v4678_v24  ;;  %v1295_v4 = vpop.f32.mrb[25].mxu0  ;;  %v3229_v22 = vpop.f32.mrb[28].mxu1  ;;  %2181 = vrot.lane.b32.xlu0 %v4773_v41, %s3813_s28 }
 0x5e1   : > { %v1296_v26 = vadd.f32 %v1295_v4, %v4680_v48  ;;  %v1525_v7 = vadd.f32 %v3229_v22, %v4682_v19  ;;  %v1297_v31 = vpop.f32.mrb[26].mxu0  ;;  %v1516_v50 = vpop.f32.mrb[29].mxu1 }
 0x5e2   : > { %v4934_v63 = vpack.c.bf16 %v1294_v37, %v1294_v37  ;;  %v1298_v8 = vadd.f32 %v1297_v31, %v4678_v24  ;;  %v1517_v6 = vadd.f32 %v1516_v50, %v4682_v19  ;;  %v1299_v38 = vpop.f32.mrb[27].mxu0  ;;  %v3230_v17 = vpop.f32.mrb[30].mxu1 }
 0x5e3   : > { %v4938_v32 = vpack.c.bf16 %v1296_v26, %v1296_v26  ;;  %v4940_v41 = vpack.c.bf16 %v1525_v7, %v1525_v7  ;;  %v1300_v20 = vadd.f32 %v1299_v38, %v4680_v48  ;;  %v1528_v5 = vadd.f32 %v3230_v17, %v4682_v19  ;;  %v1519_v44 = vpop.f32.mrb[31].mxu1  ;;  %2183 = vrot.lane.b32.xlu1 %v4796_v55, %s3813_s28 }
 0x5e4   : > { %1734 = vst.msk [vmem:[%s4692_s16 + $0x28] sm:$0xf] %vm1723_vm2, %v4934_v63  ;;  %v4949_v27 = vpack.c.bf16 %v1298_v8, %v1298_v8  ;;  %v4951_v21 = vpack.c.bf16 %v1517_v6, %v1517_v6  ;;  %v1520_v30 = vadd.f32 %v1519_v44, %v4682_v19  ;;  %2322 = vrot.lane.b32.xlu0 %v4775_v49, %s3813_s28 }
 0x5e5   : > { %1878 = vst.msk [vmem:[%s4701_s14 + $0x28] sm:$0xf] %vm1723_vm2, %v4938_v32  ;;  %2034 = vst.msk [vmem:[%s4706_s19 + $0x58] sm:$0xf] %vm1723_vm2, %v4940_v41  ;;  %v4962_v55 = vpack.c.bf16 %v1300_v20, %v1300_v20  ;;  %v4964_v52 = vpack.c.bf16 %v1528_v5, %v1528_v5 }
 0x5e6   : > { %1735 = vst.msk [vmem:[%s4692_s16 + $0x2c] sm:$0xf] %vm1723_vm2, %v4949_v27  ;;  %2032 = vst.msk [vmem:[%s4706_s19 + $0x50] sm:$0xf] %vm1723_vm2, %v4951_v21  ;;  %v4972_v34 = vpack.c.bf16 %v1520_v30, %v1520_v30 }
 0x5e7   : > { %1879 = vst.msk [vmem:[%s4701_s14 + $0x2c] sm:$0xf] %vm1723_vm2, %v4962_v55  ;;  %2035 = vst.msk [vmem:[%s4706_s19 + $0x5c] sm:$0xf] %vm1723_vm2, %v4964_v52  ;;  %v1303_v49 = vpop.f32.mrb[28].mxu0  ;;  %2324 = vrot.lane.b32.xlu1 %v4798_v29, %s3813_s28 }
 0x5e8   : > { %2033 = vst.msk [vmem:[%s4706_s19 + $0x54] sm:$0xf] %vm1723_vm2, %v4972_v34  ;;  %v1304_v54 = vadd.f32 %v1303_v49, %v4678_v24  ;;  %v1305_v43 = vpop.f32.mrb[29].mxu0  ;;  %v3233_v0 = vpop.f32.mrb[32].mxu1  ;;  %2318 = vrot.lane.b32.xlu0 %v4785_v13, %s3813_s28 }
 0x5e9   : > { %v1306_v58 = vadd.f32 %v1305_v43, %v4680_v48  ;;  %v1541_v47 = vadd.f32 %v3233_v0, %v4682_v19  ;;  %v1307_v45 = vpop.f32.mrb[30].mxu0  ;;  %v1532_v53 = vpop.f32.mrb[33].mxu1 }
 0x5ea   : > { %v4990_v40 = vpack.c.bf16 %v1304_v54, %v1304_v54  ;;  %v1308_v29 = vadd.f32 %v1307_v45, %v4678_v24  ;;  %v1533_v18 = vadd.f32 %v1532_v53, %v4682_v19  ;;  %v1309_v10 = vpop.f32.mrb[31].mxu0  ;;  %v3234_v12 = vpop.f32.mrb[34].mxu1 }
 0x5eb   : > { %v4994_v42 = vpack.c.bf16 %v1306_v58, %v1306_v58  ;;  %v4996_v13 = vpack.c.bf16 %v1541_v47, %v1541_v47  ;;  %v1310_v3 = vadd.f32 %v1309_v10, %v4680_v48  ;;  %v1544_v62 = vadd.f32 %v3234_v12, %v4682_v19  ;;  %v1535_v25 = vpop.f32.mrb[35].mxu1  ;;  %2320 = vrot.lane.b32.xlu1 %v4806_v59, %s3813_s28 }
 0x5ec   : > { %1736 = vst.msk [vmem:[%s4692_s16 + $0x30] sm:$0xf] %vm1723_vm2, %v4990_v40  ;;  %v5005_v1 = vpack.c.bf16 %v1308_v29, %v1308_v29  ;;  %v5007_v35 = vpack.c.bf16 %v1533_v18, %v1533_v18  ;;  %v1536_v2 = vadd.f32 %v1535_v25, %v4682_v19  ;;  %2056 = vrot.lane.b32.xlu0 %v4822_v16, %s3813_s28 }
 0x5ed   : > { %1880 = vst.msk [vmem:[%s4701_s14 + $0x30] sm:$0xf] %vm1723_vm2, %v4994_v42  ;;  %2038 = vst.msk [vmem:[%s4706_s19 + $0x68] sm:$0xf] %vm1723_vm2, %v4996_v13  ;;  %v5018_v59 = vpack.c.bf16 %v1310_v3, %v1310_v3  ;;  %v5020_v37 = vpack.c.bf16 %v1544_v62, %v1544_v62 }
 0x5ee   : > { %1737 = vst.msk [vmem:[%s4692_s16 + $0x34] sm:$0xf] %vm1723_vm2, %v5005_v1  ;;  %2036 = vst.msk [vmem:[%s4706_s19 + $0x60] sm:$0xf] %vm1723_vm2, %v5007_v35  ;;  %v5028_v4 = vpack.c.bf16 %v1536_v2, %v1536_v2 }
 0x5ef   : > { %1881 = vst.msk [vmem:[%s4701_s14 + $0x34] sm:$0xf] %vm1723_vm2, %v5018_v59  ;;  %2039 = vst.msk [vmem:[%s4706_s19 + $0x6c] sm:$0xf] %vm1723_vm2, %v5020_v37  ;;  %v1313_v16 = vpop.f32.mrb[32].mxu0  ;;  %2058 = vrot.lane.b32.xlu1 %v4837_v23, %s3813_s28 }
 0x5f0   : > { %2037 = vst.msk [vmem:[%s4706_s19 + $0x64] sm:$0xf] %vm1723_vm2, %v5028_v4  ;;  %v1314_v22 = vadd.f32 %v1313_v16, %v4678_v24  ;;  %v1315_v26 = vpop.f32.mrb[33].mxu0  ;;  %v3237_v7 = vpop.f32.mrb[36].mxu1  ;;  %2185 = vrot.lane.b32.xlu0 %v4826_v56, %s3813_s28 }
 0x5f1   : > { %v1316_v31 = vadd.f32 %v1315_v26, %v4680_v48  ;;  %v1557_v50 = vadd.f32 %v3237_v7, %v4682_v19  ;;  %v1317_v8 = vpop.f32.mrb[34].mxu0  ;;  %v1548_v6 = vpop.f32.mrb[37].mxu1 }
 0x5f2   : > { %v5046_v38 = vpack.c.bf16 %v1314_v22, %v1314_v22  ;;  %v1318_v23 = vadd.f32 %v1317_v8, %v4678_v24  ;;  %v1549_v17 = vadd.f32 %v1548_v6, %v4682_v19  ;;  %v1319_v20 = vpop.f32.mrb[35].mxu0  ;;  %v3238_v5 = vpop.f32.mrb[38].mxu1 }
 0x5f3   : > { %v5050_v44 = vpack.c.bf16 %v1316_v31, %v1316_v31  ;;  %v5052_v56 = vpack.c.bf16 %v1557_v50, %v1557_v50  ;;  %v1320_v30 = vadd.f32 %v1319_v20, %v4680_v48  ;;  %v1560_v49 = vadd.f32 %v3238_v5, %v4682_v19  ;;  %v1551_v54 = vpop.f32.mrb[39].mxu1  ;;  %2187 = vrot.lane.b32.xlu1 %v4850_v36, %s3813_s28 }
 0x5f4   : > { %1738 = vst.msk [vmem:[%s4692_s16 + $0x38] sm:$0xf] %vm1723_vm2, %v5046_v38  ;;  %v5061_v43 = vpack.c.bf16 %v1318_v23, %v1318_v23  ;;  %v5063_v0 = vpack.c.bf16 %v1549_v17, %v1549_v17  ;;  %v1552_v58 = vadd.f32 %v1551_v54, %v4682_v19  ;;  %2330 = vrot.lane.b32.xlu0 %v4828_v46, %s3813_s28 }
 0x5f5   : > { %1882 = vst.msk [vmem:[%s4701_s14 + $0x38] sm:$0xf] %vm1723_vm2, %v5050_v44  ;;  %2042 = vst.msk [vmem:[%s4706_s19 + $0x78] sm:$0xf] %vm1723_vm2, %v5052_v56  ;;  %v5074_v36 = vpack.c.bf16 %v1320_v30, %v1320_v30  ;;  %v5076_v47 = vpack.c.bf16 %v1560_v49, %v1560_v49 }
 0x5f6   : > { %1739 = vst.msk [vmem:[%s4692_s16 + $0x3c] sm:$0xf] %vm1723_vm2, %v5061_v43  ;;  %2040 = vst.msk [vmem:[%s4706_s19 + $0x70] sm:$0xf] %vm1723_vm2, %v5063_v0  ;;  %v5084_v19 = vpack.c.bf16 %v1552_v58, %v1552_v58 }
 0x5f7   : > { %1883 = vst.msk [vmem:[%s4701_s14 + $0x3c] sm:$0xf] %vm1723_vm2, %v5074_v36  ;;  %2043 = vst.msk [vmem:[%s4706_s19 + $0x7c] sm:$0xf] %vm1723_vm2, %v5076_v47  ;;  %v1323_v46 = vpop.f32.mrb[36].mxu0  ;;  %2332 = vrot.lane.b32.xlu1 %v4852_v33, %s3813_s28 }
 0x5f8   : > { %2041 = vst.msk [vmem:[%s4706_s19 + $0x74] sm:$0xf] %vm1723_vm2, %v5084_v19  ;;  %v1324_v45 = vadd.f32 %v1323_v46, %v4678_v24  ;;  %v1325_v53 = vpop.f32.mrb[37].mxu0  ;;  %2326 = vrot.lane.b32.xlu0 %v4839_v28, %s3813_s28 }
 0x5f9   : > { %v1326_v29 = vadd.f32 %v1325_v53, %v4680_v48  ;;  %v1327_v18 = vpop.f32.mrb[38].mxu0 }
 0x5fa   : > { %v5101_v10 = vpack.c.bf16 %v1324_v45, %v1324_v45  ;;  %v1328_v12 = vadd.f32 %v1327_v18, %v4678_v24  ;;  %v1329_v33 = vpop.f32.mrb[39].mxu0 }
 0x5fb   : > { %v5104_v3 = vpack.c.bf16 %v1326_v29, %v1326_v29  ;;  %v1330_v62 = vadd.f32 %v1329_v33, %v4680_v48  ;;  %2328 = vrot.lane.b32.xlu1 %v4860_v39, %s3813_s28 }
 0x5fc   : > { %1740 = vst.msk [vmem:[%s4692_s16 + $0x40] sm:$0xf] %vm1723_vm2, %v5101_v10  ;;  %v5112_v25 = vpack.c.bf16 %v1328_v12, %v1328_v12  ;;  %2060 = vrot.lane.b32.xlu0 %v4878_v61, %s3813_s28 }
 0x5fd   : > { %1884 = vst.msk [vmem:[%s4701_s14 + $0x40] sm:$0xf] %vm1723_vm2, %v5104_v3  ;;  %v5119_v28 = vpack.c.bf16 %v1330_v62, %v1330_v62 }
 0x5fe   : > { %1741 = vst.msk [vmem:[%s4692_s16 + $0x44] sm:$0xf] %vm1723_vm2, %v5112_v25 }
 0x5ff   : > { %1885 = vst.msk [vmem:[%s4701_s14 + $0x44] sm:$0xf] %vm1723_vm2, %v5119_v28  ;;  %v1333_v39 = vpop.f32.mrb[40].mxu0  ;;  %2062 = vrot.lane.b32.xlu1 %v4893_v14, %s3813_s28 }
 0x600   : > { %v1334_v2 = vadd.f32 %v1333_v39, %v4678_v24  ;;  %v1335_v61 = vpop.f32.mrb[41].mxu0  ;;  %2189 = vrot.lane.b32.xlu0 %v4882_v9, %s3813_s28 }
 0x601   : > { %v1336_v16 = vadd.f32 %v1335_v61, %v4680_v48  ;;  %v1337_v22 = vpop.f32.mrb[42].mxu0 }
 0x602   : > { %v5133_v26 = vpack.c.bf16 %v1334_v2, %v1334_v2  ;;  %v1338_v7 = vadd.f32 %v1337_v22, %v4678_v24  ;;  %v1339_v31 = vpop.f32.mrb[43].mxu0 }
 0x603   : > { %v5136_v50 = vpack.c.bf16 %v1336_v16, %v1336_v16  ;;  %v1340_v14 = vadd.f32 %v1339_v31, %v4680_v48  ;;  %2191 = vrot.lane.b32.xlu1 %v4906_v60, %s3813_s28 }
 0x604   : > { %1742 = vst.msk [vmem:[%s4692_s16 + $0x48] sm:$0xf] %vm1723_vm2, %v5133_v26  ;;  %v5144_v8 = vpack.c.bf16 %v1338_v7, %v1338_v7  ;;  %2338 = vrot.lane.b32.xlu0 %v4884_v57, %s3813_s28 }
 0x605   : > { %1886 = vst.msk [vmem:[%s4701_s14 + $0x48] sm:$0xf] %vm1723_vm2, %v5136_v50  ;;  %v5151_v9 = vpack.c.bf16 %v1340_v14, %v1340_v14 }
 0x606   : > { %1743 = vst.msk [vmem:[%s4692_s16 + $0x4c] sm:$0xf] %vm1723_vm2, %v5144_v8 }
 0x607   : > { %1887 = vst.msk [vmem:[%s4701_s14 + $0x4c] sm:$0xf] %vm1723_vm2, %v5151_v9  ;;  %v1343_v60 = vpop.f32.mrb[44].mxu0  ;;  %2340 = vrot.lane.b32.xlu1 %v4908_v51, %s3813_s28 }
 0x608   : > { %v1344_v6 = vadd.f32 %v1343_v60, %v4678_v24  ;;  %v1345_v57 = vpop.f32.mrb[45].mxu0  ;;  %2334 = vrot.lane.b32.xlu0 %v4895_v15, %s3813_s28 }
 0x609   : > { %v1346_v23 = vadd.f32 %v1345_v57, %v4680_v48  ;;  %v1347_v17 = vpop.f32.mrb[46].mxu0 }
 0x60a   : > { %v5165_v20 = vpack.c.bf16 %v1344_v6, %v1344_v6  ;;  %v1348_v5 = vadd.f32 %v1347_v17, %v4678_v24  ;;  %v1349_v30 = vpop.f32.mrb[47].mxu0 }
 0x60b   : > { %v5168_v49 = vpack.c.bf16 %v1346_v23, %v1346_v23  ;;  %v1350_v51 = vadd.f32 %v1349_v30, %v4680_v48  ;;  %2336 = vrot.lane.b32.xlu1 %v4916_v11, %s3813_s28 }
 0x60c   : > { %1744 = vst.msk [vmem:[%s4692_s16 + $0x50] sm:$0xf] %vm1723_vm2, %v5165_v20  ;;  %v5176_v54 = vpack.c.bf16 %v1348_v5, %v1348_v5  ;;  %2064 = vrot.lane.b32.xlu0 %v4934_v63, %s3813_s28 }
 0x60d   : > { %1888 = vst.msk [vmem:[%s4701_s14 + $0x50] sm:$0xf] %vm1723_vm2, %v5168_v49  ;;  %v5183_v15 = vpack.c.bf16 %v1350_v51, %v1350_v51 }
 0x60e   : > { %1745 = vst.msk [vmem:[%s4692_s16 + $0x54] sm:$0xf] %vm1723_vm2, %v5176_v54 }
 0x60f   : > { %1889 = vst.msk [vmem:[%s4701_s14 + $0x54] sm:$0xf] %vm1723_vm2, %v5183_v15  ;;  %v1353_v11 = vpop.f32.mrb[48].mxu0  ;;  %2066 = vrot.lane.b32.xlu1 %v4949_v27, %s3813_s28 }
 0x610   : > { %v1354_v58 = vadd.f32 %v1353_v11, %v4678_v24  ;;  %v1355_v63 = vpop.f32.mrb[49].mxu0  ;;  %2193 = vrot.lane.b32.xlu0 %v4938_v32, %s3813_s28 }
 0x611   : > { %v1356_v46 = vadd.f32 %v1355_v63, %v4680_v48  ;;  %v1357_v45 = vpop.f32.mrb[50].mxu0 }
 0x612   : > { %v5197_v53 = vpack.c.bf16 %v1354_v58, %v1354_v58  ;;  %v1358_v29 = vadd.f32 %v1357_v45, %v4678_v24  ;;  %v1359_v18 = vpop.f32.mrb[51].mxu0 }
 0x613   : > { %v5200_v12 = vpack.c.bf16 %v1356_v46, %v1356_v46  ;;  %v1360_v27 = vadd.f32 %v1359_v18, %v4680_v48  ;;  %2195 = vrot.lane.b32.xlu1 %v4962_v55, %s3813_s28 }
 0x614   : > { %1746 = vst.msk [vmem:[%s4692_s16 + $0x58] sm:$0xf] %vm1723_vm2, %v5197_v53  ;;  %v5208_v33 = vpack.c.bf16 %v1358_v29, %v1358_v29  ;;  %2346 = vrot.lane.b32.xlu0 %v4940_v41, %s3813_s28 }
 0x615   : > { %1890 = vst.msk [vmem:[%s4701_s14 + $0x58] sm:$0xf] %vm1723_vm2, %v5200_v12  ;;  %v5215_v32 = vpack.c.bf16 %v1360_v27, %v1360_v27 }
 0x616   : > { %1747 = vst.msk [vmem:[%s4692_s16 + $0x5c] sm:$0xf] %vm1723_vm2, %v5208_v33 }
 0x617   : > { %1891 = vst.msk [vmem:[%s4701_s14 + $0x5c] sm:$0xf] %vm1723_vm2, %v5215_v32  ;;  %v1363_v55 = vpop.f32.mrb[52].mxu0  ;;  %2348 = vrot.lane.b32.xlu1 %v4964_v52, %s3813_s28 }
 0x618   : > { %v1364_v62 = vadd.f32 %v1363_v55, %v4678_v24  ;;  %v1365_v41 = vpop.f32.mrb[53].mxu0  ;;  %2342 = vrot.lane.b32.xlu0 %v4951_v21, %s3813_s28 }
 0x619   : > { %v1366_v39 = vadd.f32 %v1365_v41, %v4680_v48  ;;  %v1367_v2 = vpop.f32.mrb[54].mxu0 }
 0x61a   : > { %v5229_v61 = vpack.c.bf16 %v1364_v62, %v1364_v62  ;;  %v1368_v16 = vadd.f32 %v1367_v2, %v4678_v24  ;;  %v1369_v22 = vpop.f32.mrb[55].mxu0 }
 0x61b   : > { %v5232_v7 = vpack.c.bf16 %v1366_v39, %v1366_v39  ;;  %v1370_v52 = vadd.f32 %v1369_v22, %v4680_v48  ;;  %2344 = vrot.lane.b32.xlu1 %v4972_v34, %s3813_s28 }
 0x61c   : > { %1748 = vst.msk [vmem:[%s4692_s16 + $0x60] sm:$0xf] %vm1723_vm2, %v5229_v61  ;;  %v5240_v31 = vpack.c.bf16 %v1368_v16, %v1368_v16  ;;  %2068 = vrot.lane.b32.xlu0 %v4990_v40, %s3813_s28 }
 0x61d   : > { %1892 = vst.msk [vmem:[%s4701_s14 + $0x60] sm:$0xf] %vm1723_vm2, %v5232_v7  ;;  %v5247_v21 = vpack.c.bf16 %v1370_v52, %v1370_v52 }
 0x61e   : > { %1749 = vst.msk [vmem:[%s4692_s16 + $0x64] sm:$0xf] %vm1723_vm2, %v5240_v31 }
 0x61f   : > { %1893 = vst.msk [vmem:[%s4701_s14 + $0x64] sm:$0xf] %vm1723_vm2, %v5247_v21  ;;  %v1373_v34 = vpop.f32.mrb[56].mxu0  ;;  %2070 = vrot.lane.b32.xlu1 %v5005_v1, %s3813_s28 }
 0x620   : > { %v1374_v14 = vadd.f32 %v1373_v34, %v4678_v24  ;;  %v1375_v40 = vpop.f32.mrb[57].mxu0  ;;  %2197 = vrot.lane.b32.xlu0 %v4994_v42, %s3813_s28 }
 0x621   : > { %v1376_v60 = vadd.f32 %v1375_v40, %v4680_v48  ;;  %v1377_v6 = vpop.f32.mrb[58].mxu0 }
 0x622   : > { %v5261_v57 = vpack.c.bf16 %v1374_v14, %v1374_v14  ;;  %v1378_v23 = vadd.f32 %v1377_v6, %v4678_v24  ;;  %v1379_v17 = vpop.f32.mrb[59].mxu0 }
 0x623   : > { %v5264_v5 = vpack.c.bf16 %v1376_v60, %v1376_v60  ;;  %v1380_v1 = vadd.f32 %v1379_v17, %v4680_v48  ;;  %2199 = vrot.lane.b32.xlu1 %v5018_v59, %s3813_s28 }
 0x624   : > { %1750 = vst.msk [vmem:[%s4692_s16 + $0x68] sm:$0xf] %vm1723_vm2, %v5261_v57  ;;  %v5272_v30 = vpack.c.bf16 %v1378_v23, %v1378_v23  ;;  %2354 = vrot.lane.b32.xlu0 %v4996_v13, %s3813_s28 }
 0x625   : > { %1894 = vst.msk [vmem:[%s4701_s14 + $0x68] sm:$0xf] %vm1723_vm2, %v5264_v5  ;;  %v5279_v42 = vpack.c.bf16 %v1380_v1, %v1380_v1 }
 0x626   : > { %1751 = vst.msk [vmem:[%s4692_s16 + $0x6c] sm:$0xf] %vm1723_vm2, %v5272_v30 }
 0x627   : > { %1895 = vst.msk [vmem:[%s4701_s14 + $0x6c] sm:$0xf] %vm1723_vm2, %v5279_v42  ;;  %v1383_v59 = vpop.f32.mrb[60].mxu0  ;;  %2356 = vrot.lane.b32.xlu1 %v5020_v37, %s3813_s28 }
 0x628   : > { %v1384_v51 = vadd.f32 %v1383_v59, %v4678_v24  ;;  %v1385_v13 = vpop.f32.mrb[61].mxu0  ;;  %2350 = vrot.lane.b32.xlu0 %v5007_v35, %s3813_s28 }
 0x629   : > { %v1386_v11 = vadd.f32 %v1385_v13, %v4680_v48  ;;  %v1387_v58 = vpop.f32.mrb[62].mxu0 }
 0x62a   : > { %v5293_v63 = vpack.c.bf16 %v1384_v51, %v1384_v51  ;;  %v1388_v46 = vadd.f32 %v1387_v58, %v4678_v24  ;;  %v1389_v45 = vpop.f32.mrb[63].mxu0 }
 0x62b   : > { %v5296_v29 = vpack.c.bf16 %v1386_v11, %v1386_v11  ;;  %v1390_v37 = vadd.f32 %v1389_v45, %v4680_v48  ;;  %2352 = vrot.lane.b32.xlu1 %v5028_v4, %s3813_s28 }
 0x62c   : > { %1752 = vst.msk [vmem:[%s4692_s16 + $0x70] sm:$0xf] %vm1723_vm2, %v5293_v63  ;;  %v5304_v35 = vpack.c.bf16 %v1388_v46, %v1388_v46  ;;  %2072 = vrot.lane.b32.xlu0 %v5046_v38, %s3813_s28 }
 0x62d   : > { %1896 = vst.msk [vmem:[%s4701_s14 + $0x70] sm:$0xf] %vm1723_vm2, %v5296_v29  ;;  %v5311_v18 = vpack.c.bf16 %v1390_v37, %v1390_v37 }
 0x62e   : > { %1753 = vst.msk [vmem:[%s4692_s16 + $0x74] sm:$0xf] %vm1723_vm2, %v5304_v35  ;;  %v2045_v27 = vpop.permute.xlu0 %2044 }
 0x62f   : > { %1897 = vst.msk [vmem:[%s4701_s14 + $0x74] sm:$0xf] %vm1723_vm2, %v5311_v18  ;;  %2824 = vst.msk [vmem:[%s4692_s16 + $0x80] sm:$0xf] %vm1723_vm2, %v2045_v27  ;;  %v1393_v4 = vpop.f32.mrb[64].mxu0  ;;  %2074 = vrot.lane.b32.xlu1 %v5061_v43, %s3813_s28 }
 0x630   : > { %v1394_v38 = vadd.f32 %v1393_v4, %v4678_v24  ;;  %v1395_v55 = vpop.f32.mrb[65].mxu0  ;;  %2201 = vrot.lane.b32.xlu0 %v5050_v44, %s3813_s28 }
 0x631   : > { %v1396_v62 = vadd.f32 %v1395_v55, %v4680_v48  ;;  %v1397_v41 = vpop.f32.mrb[66].mxu0  ;;  %v2176_v39 = vpop.permute.xlu1 %2175 }
 0x632   : > { %v5327_v2 = vpack.c.bf16 %v1394_v38, %v1394_v38  ;;  %v1398_v16 = vadd.f32 %v1397_v41, %v4678_v24  ;;  %2857 = vst.msk [vmem:[%s4701_s14 + $0x84] sm:$0xf] %vm1723_vm2, %v2176_v39  ;;  %v1399_v43 = vpop.f32.mrb[67].mxu0  ;;  %v2174_v22 = vpop.permute.xlu0 %2173 }
 0x633   : > { %v5332_v52 = vpack.c.bf16 %v1396_v62, %v1396_v62  ;;  %v1400_v44 = vadd.f32 %v1399_v43, %v4680_v48  ;;  %2856 = vst.msk [vmem:[%s4701_s14 + $0x80] sm:$0xf] %vm1723_vm2, %v2174_v22  ;;  %2203 = vrot.lane.b32.xlu1 %v5074_v36, %s3813_s28 }
 0x634   : > { %1754 = vst.msk [vmem:[%s4692_s16 + $0x78] sm:$0xf] %vm1723_vm2, %v5327_v2  ;;  %v5342_v24 = vpack.c.bf16 %v1398_v16, %v1398_v16  ;;  %2358 = vrot.lane.b32.xlu0 %v5063_v0, %s3813_s28 }
 0x635   : > { %1898 = vst.msk [vmem:[%s4701_s14 + $0x78] sm:$0xf] %vm1723_vm2, %v5332_v52  ;;  %v5349_v34 = vpack.c.bf16 %v1400_v44, %v1400_v44  ;;  %v2309_v48 = vpop.permute.xlu1 %2308 }
 0x636   : > { %1755 = vst.msk [vmem:[%s4692_s16 + $0x7c] sm:$0xf] %vm1723_vm2, %v5342_v24  ;;  %2891 = vst.msk [vmem:[%s4706_s19 + $0x8c] sm:$0xf] %vm1723_vm2, %v2309_v48  ;;  %v2307_v36 = vpop.permute.xlu0 %2306 }
 0x637   : > { %1899 = vst.msk [vmem:[%s4701_s14 + $0x7c] sm:$0xf] %vm1723_vm2, %v5349_v34  ;;  %2890 = vst.msk [vmem:[%s4706_s19 + $0x88] sm:$0xf] %vm1723_vm2, %v2307_v36  ;;  %2360 = vrot.lane.b32.xlu1 %v5084_v19, %s3813_s28 }
 0x638   : > { %2076 = vrot.lane.b32.xlu0 %v5101_v10, %s3813_s28 }
 0x639   : > { %v2305_v0 = vpop.permute.xlu1 %2304 }
 0x63a   : > { %2889 = vst.msk [vmem:[%s4706_s19 + $0x84] sm:$0xf] %vm1723_vm2, %v2305_v0  ;;  %v2047_v14 = vpop.permute.xlu0 %2046 }
 0x63b   : > { %2825 = vst.msk [vmem:[%s4692_s16 + $0x84] sm:$0xf] %vm1723_vm2, %v2047_v14  ;;  %2078 = vrot.lane.b32.xlu1 %v5112_v25, %s3813_s28 }
 0x63c   : > { %2205 = vrot.lane.b32.xlu0 %v5104_v3, %s3813_s28 }
 0x63d   : > { %v2049_v40 = vpop.permute.xlu1 %2048 }
 0x63e   : > { %2826 = vst.msk [vmem:[%s4692_s16 + $0x88] sm:$0xf] %vm1723_vm2, %v2049_v40  ;;  %v2303_v19 = vpop.permute.xlu0 %2302 }
 0x63f   : > { %2888 = vst.msk [vmem:[%s4706_s19 + $0x80] sm:$0xf] %vm1723_vm2, %v2303_v19  ;;  %2207 = vrot.lane.b32.xlu1 %v5119_v28, %s3813_s28 }
 0x640   : > { %2080 = vrot.lane.b32.xlu0 %v5133_v26, %s3813_s28 }
 0x641   : > { %v2051_v10 = vpop.permute.xlu1 %2050 }
 0x642   : > { %2827 = vst.msk [vmem:[%s4692_s16 + $0x8c] sm:$0xf] %vm1723_vm2, %v2051_v10  ;;  %v2178_v25 = vpop.permute.xlu0 %2177 }
 0x643   : > { %2858 = vst.msk [vmem:[%s4701_s14 + $0x88] sm:$0xf] %vm1723_vm2, %v2178_v25  ;;  %2082 = vrot.lane.b32.xlu1 %v5144_v8, %s3813_s28 }
 0x644   : > { %2209 = vrot.lane.b32.xlu0 %v5136_v50, %s3813_s28 }
 0x645   : > { %v2180_v3 = vpop.permute.xlu1 %2179 }
 0x646   : > { %2859 = vst.msk [vmem:[%s4701_s14 + $0x8c] sm:$0xf] %vm1723_vm2, %v2180_v3  ;;  %v2315_v28 = vpop.permute.xlu0 %2314 }
 0x647   : > { %2894 = vst.msk [vmem:[%s4706_s19 + $0x98] sm:$0xf] %vm1723_vm2, %v2315_v28  ;;  %2211 = vrot.lane.b32.xlu1 %v5151_v9, %s3813_s28 }
 0x648   : > { %2084 = vrot.lane.b32.xlu0 %v5165_v20, %s3813_s28 }
 0x649   : > { %v2317_v26 = vpop.permute.xlu1 %2316 }
 0x64a   : > { %2895 = vst.msk [vmem:[%s4706_s19 + $0x9c] sm:$0xf] %vm1723_vm2, %v2317_v26  ;;  %v2311_v8 = vpop.permute.xlu0 %2310 }
 0x64b   : > { %2892 = vst.msk [vmem:[%s4706_s19 + $0x90] sm:$0xf] %vm1723_vm2, %v2311_v8  ;;  %2086 = vrot.lane.b32.xlu1 %v5176_v54, %s3813_s28 }
 0x64c   : > { %2213 = vrot.lane.b32.xlu0 %v5168_v49, %s3813_s28 }
 0x64d   : > { %v2313_v50 = vpop.permute.xlu1 %2312 }
 0x64e   : > { %2893 = vst.msk [vmem:[%s4706_s19 + $0x94] sm:$0xf] %vm1723_vm2, %v2313_v50  ;;  %v2053_v9 = vpop.permute.xlu0 %2052 }
 0x64f   : > { %2828 = vst.msk [vmem:[%s4692_s16 + $0x90] sm:$0xf] %vm1723_vm2, %v2053_v9  ;;  %2215 = vrot.lane.b32.xlu1 %v5183_v15, %s3813_s28 }
 0x650   : > { %2088 = vrot.lane.b32.xlu0 %v5197_v53, %s3813_s28 }
 0x651   : > { %v2055_v20 = vpop.permute.xlu1 %2054 }
 0x652   : > { %2829 = vst.msk [vmem:[%s4692_s16 + $0x94] sm:$0xf] %vm1723_vm2, %v2055_v20  ;;  %v2182_v54 = vpop.permute.xlu0 %2181 }
 0x653   : > { %2860 = vst.msk [vmem:[%s4701_s14 + $0x90] sm:$0xf] %vm1723_vm2, %v2182_v54  ;;  %2090 = vrot.lane.b32.xlu1 %v5208_v33, %s3813_s28 }
 0x654   : > { %2217 = vrot.lane.b32.xlu0 %v5200_v12, %s3813_s28 }
 0x655   : > { %v2184_v49 = vpop.permute.xlu1 %2183 }
 0x656   : > { %2861 = vst.msk [vmem:[%s4701_s14 + $0x94] sm:$0xf] %vm1723_vm2, %v2184_v49  ;;  %v2323_v15 = vpop.permute.xlu0 %2322 }
 0x657   : > { %2898 = vst.msk [vmem:[%s4706_s19 + $0xa8] sm:$0xf] %vm1723_vm2, %v2323_v15  ;;  %2219 = vrot.lane.b32.xlu1 %v5215_v32, %s3813_s28 }
 0x658   : > { %2092 = vrot.lane.b32.xlu0 %v5229_v61, %s3813_s28 }
 0x659   : > { %v2325_v53 = vpop.permute.xlu1 %2324 }
 0x65a   : > { %2899 = vst.msk [vmem:[%s4706_s19 + $0xac] sm:$0xf] %vm1723_vm2, %v2325_v53  ;;  %v2319_v33 = vpop.permute.xlu0 %2318 }
 0x65b   : > { %2896 = vst.msk [vmem:[%s4706_s19 + $0xa0] sm:$0xf] %vm1723_vm2, %v2319_v33  ;;  %2094 = vrot.lane.b32.xlu1 %v5240_v31, %s3813_s28 }
 0x65c   : > { %2221 = vrot.lane.b32.xlu0 %v5232_v7, %s3813_s28 }
 0x65d   : > { %v2321_v12 = vpop.permute.xlu1 %2320 }
 0x65e   : > { %2897 = vst.msk [vmem:[%s4706_s19 + $0xa4] sm:$0xf] %vm1723_vm2, %v2321_v12  ;;  %v2057_v32 = vpop.permute.xlu0 %2056 }
 0x65f   : > { %2830 = vst.msk [vmem:[%s4692_s16 + $0x98] sm:$0xf] %vm1723_vm2, %v2057_v32  ;;  %2223 = vrot.lane.b32.xlu1 %v5247_v21, %s3813_s28 }
 0x660   : > { %2096 = vrot.lane.b32.xlu0 %v5261_v57, %s3813_s28 }
 0x661   : > { %v2059_v61 = vpop.permute.xlu1 %2058 }
 0x662   : > { %2831 = vst.msk [vmem:[%s4692_s16 + $0x9c] sm:$0xf] %vm1723_vm2, %v2059_v61  ;;  %v2186_v31 = vpop.permute.xlu0 %2185 }
 0x663   : > { %2862 = vst.msk [vmem:[%s4701_s14 + $0x98] sm:$0xf] %vm1723_vm2, %v2186_v31  ;;  %2098 = vrot.lane.b32.xlu1 %v5272_v30, %s3813_s28 }
 0x664   : > { %2225 = vrot.lane.b32.xlu0 %v5264_v5, %s3813_s28 }
 0x665   : > { %v2188_v7 = vpop.permute.xlu1 %2187 }
 0x666   : > { %2863 = vst.msk [vmem:[%s4701_s14 + $0x9c] sm:$0xf] %vm1723_vm2, %v2188_v7  ;;  %v2331_v21 = vpop.permute.xlu0 %2330 }
 0x667   : > { %2902 = vst.msk [vmem:[%s4706_s19 + $0xb8] sm:$0xf] %vm1723_vm2, %v2331_v21  ;;  %2227 = vrot.lane.b32.xlu1 %v5279_v42, %s3813_s28 }
 0x668   : > { %2100 = vrot.lane.b32.xlu0 %v5293_v63, %s3813_s28 }
 0x669   : > { %v2333_v60 = vpop.permute.xlu1 %2332 }
 0x66a   : > { %2903 = vst.msk [vmem:[%s4706_s19 + $0xbc] sm:$0xf] %vm1723_vm2, %v2333_v60  ;;  %v2327_v6 = vpop.permute.xlu0 %2326 }
 0x66b   : > { %2900 = vst.msk [vmem:[%s4706_s19 + $0xb0] sm:$0xf] %vm1723_vm2, %v2327_v6  ;;  %2102 = vrot.lane.b32.xlu1 %v5304_v35, %s3813_s28 }
 0x66c   : > { %2229 = vrot.lane.b32.xlu0 %v5296_v29, %s3813_s28 }
 0x66d   : > { %v2329_v57 = vpop.permute.xlu1 %2328 }
 0x66e   : > { %2901 = vst.msk [vmem:[%s4706_s19 + $0xb4] sm:$0xf] %vm1723_vm2, %v2329_v57  ;;  %v2061_v23 = vpop.permute.xlu0 %2060 }
 0x66f   : > { %2832 = vst.msk [vmem:[%s4692_s16 + $0xa0] sm:$0xf] %vm1723_vm2, %v2061_v23  ;;  %2231 = vrot.lane.b32.xlu1 %v5311_v18, %s3813_s28 }
 0x670   : > { %2104 = vrot.lane.b32.xlu0 %v5327_v2, %s3813_s28 }
 0x671   : > { %v2063_v17 = vpop.permute.xlu1 %2062 }
 0x672   : > { %2833 = vst.msk [vmem:[%s4692_s16 + $0xa4] sm:$0xf] %vm1723_vm2, %v2063_v17  ;;  %v2190_v5 = vpop.permute.xlu0 %2189 }
 0x673   : > { %2864 = vst.msk [vmem:[%s4701_s14 + $0xa0] sm:$0xf] %vm1723_vm2, %v2190_v5  ;;  %2106 = vrot.lane.b32.xlu1 %v5342_v24, %s3813_s28 }
 0x674   : > { %2233 = vrot.lane.b32.xlu0 %v5332_v52, %s3813_s28 }
 0x675   : > { %v2192_v1 = vpop.permute.xlu1 %2191 }
 0x676   : > { %2865 = vst.msk [vmem:[%s4701_s14 + $0xa4] sm:$0xf] %vm1723_vm2, %v2192_v1  ;;  %v2339_v30 = vpop.permute.xlu0 %2338 }
 0x677   : > { %2906 = vst.msk [vmem:[%s4706_s19 + $0xc8] sm:$0xf] %vm1723_vm2, %v2339_v30  ;;  %2235 = vrot.lane.b32.xlu1 %v5349_v34, %s3813_s28 }
 0x678   : > { %2362 = vrot.lane.b32.xlu0 %v5052_v56, %s3813_s28 }
 0x679   : > { %v2341_v42 = vpop.permute.xlu1 %2340 }
 0x67a   : > { %2907 = vst.msk [vmem:[%s4706_s19 + $0xcc] sm:$0xf] %vm1723_vm2, %v2341_v42  ;;  %v2335_v59 = vpop.permute.xlu0 %2334 }
 0x67b   : > { %2904 = vst.msk [vmem:[%s4706_s19 + $0xc0] sm:$0xf] %vm1723_vm2, %v2335_v59  ;;  %2364 = vrot.lane.b32.xlu1 %v5076_v47, %s3813_s28 }
 0x67d   : > { %v2337_v51 = vpop.permute.xlu1 %2336 }
 0x67e   : > { %2905 = vst.msk [vmem:[%s4706_s19 + $0xc4] sm:$0xf] %vm1723_vm2, %v2337_v51  ;;  %v2065_v13 = vpop.permute.xlu0 %2064 }
 0x67f   : > { %2834 = vst.msk [vmem:[%s4692_s16 + $0xa8] sm:$0xf] %vm1723_vm2, %v2065_v13 }
 0x681   : > { %v2067_v56 = vpop.permute.xlu1 %2066 }
 0x682   : > { %2835 = vst.msk [vmem:[%s4692_s16 + $0xac] sm:$0xf] %vm1723_vm2, %v2067_v56  ;;  %v2194_v11 = vpop.permute.xlu0 %2193 }
 0x683   : > { %2866 = vst.msk [vmem:[%s4701_s14 + $0xa8] sm:$0xf] %vm1723_vm2, %v2194_v11 }
 0x685   : > { %v2196_v58 = vpop.permute.xlu1 %2195 }
 0x686   : > { %2867 = vst.msk [vmem:[%s4701_s14 + $0xac] sm:$0xf] %vm1723_vm2, %v2196_v58  ;;  %v2347_v47 = vpop.permute.xlu0 %2346 }
 0x687   : > { %2910 = vst.msk [vmem:[%s4706_s19 + $0xd8] sm:$0xf] %vm1723_vm2, %v2347_v47 }
 0x689   : > { %v2349_v63 = vpop.permute.xlu1 %2348 }
 0x68a   : > { %2911 = vst.msk [vmem:[%s4706_s19 + $0xdc] sm:$0xf] %vm1723_vm2, %v2349_v63  ;;  %v2343_v46 = vpop.permute.xlu0 %2342 }
 0x68b   : > { %2908 = vst.msk [vmem:[%s4706_s19 + $0xd0] sm:$0xf] %vm1723_vm2, %v2343_v46 }
 0x68d   : > { %v2345_v45 = vpop.permute.xlu1 %2344 }
 0x68e   : > { %2909 = vst.msk [vmem:[%s4706_s19 + $0xd4] sm:$0xf] %vm1723_vm2, %v2345_v45  ;;  %v2069_v29 = vpop.permute.xlu0 %2068 }
 0x68f   : > { %2836 = vst.msk [vmem:[%s4692_s16 + $0xb0] sm:$0xf] %vm1723_vm2, %v2069_v29 }
 0x691   : > { %v2071_v37 = vpop.permute.xlu1 %2070 }
 0x692   : > { %2837 = vst.msk [vmem:[%s4692_s16 + $0xb4] sm:$0xf] %vm1723_vm2, %v2071_v37  ;;  %v2198_v35 = vpop.permute.xlu0 %2197 }
 0x693   : > { %2868 = vst.msk [vmem:[%s4701_s14 + $0xb0] sm:$0xf] %vm1723_vm2, %v2198_v35 }
 0x695   : > { %v2200_v18 = vpop.permute.xlu1 %2199 }
 0x696   : > { %2869 = vst.msk [vmem:[%s4701_s14 + $0xb4] sm:$0xf] %vm1723_vm2, %v2200_v18  ;;  %v2355_v27 = vpop.permute.xlu0 %2354 }
 0x697   : > { %2914 = vst.msk [vmem:[%s4706_s19 + $0xe8] sm:$0xf] %vm1723_vm2, %v2355_v27 }
 0x699   : > { %v2357_v4 = vpop.permute.xlu1 %2356 }
 0x69a   : > { %2915 = vst.msk [vmem:[%s4706_s19 + $0xec] sm:$0xf] %vm1723_vm2, %v2357_v4  ;;  %v2351_v38 = vpop.permute.xlu0 %2350 }
 0x69b   : > { %2912 = vst.msk [vmem:[%s4706_s19 + $0xe0] sm:$0xf] %vm1723_vm2, %v2351_v38 }
 0x69d   : > { %v2353_v55 = vpop.permute.xlu1 %2352 }
 0x69e   : > { %2913 = vst.msk [vmem:[%s4706_s19 + $0xe4] sm:$0xf] %vm1723_vm2, %v2353_v55  ;;  %v2073_v62 = vpop.permute.xlu0 %2072 }
 0x69f   : > { %2838 = vst.msk [vmem:[%s4692_s16 + $0xb8] sm:$0xf] %vm1723_vm2, %v2073_v62 }
 0x6a1   : > { %v2075_v41 = vpop.permute.xlu1 %2074 }
 0x6a2   : > { %2839 = vst.msk [vmem:[%s4692_s16 + $0xbc] sm:$0xf] %vm1723_vm2, %v2075_v41  ;;  %v2202_v39 = vpop.permute.xlu0 %2201 }
 0x6a3   : > { %2870 = vst.msk [vmem:[%s4701_s14 + $0xb8] sm:$0xf] %vm1723_vm2, %v2202_v39 }
 0x6a5   : > { %v2204_v2 = vpop.permute.xlu1 %2203 }
 0x6a6   : > { %2871 = vst.msk [vmem:[%s4701_s14 + $0xbc] sm:$0xf] %vm1723_vm2, %v2204_v2  ;;  %v2359_v16 = vpop.permute.xlu0 %2358 }
 0x6a7   : > { %2916 = vst.msk [vmem:[%s4706_s19 + $0xf0] sm:$0xf] %vm1723_vm2, %v2359_v16 }
 0x6a9   : > { %v2361_v43 = vpop.permute.xlu1 %2360 }
 0x6aa   : > { %2917 = vst.msk [vmem:[%s4706_s19 + $0xf4] sm:$0xf] %vm1723_vm2, %v2361_v43  ;;  %v2077_v22 = vpop.permute.xlu0 %2076 }
 0x6ab   : > { %2840 = vst.msk [vmem:[%s4692_s16 + $0xc0] sm:$0xf] %vm1723_vm2, %v2077_v22 }
 0x6ad   : > { %v2079_v52 = vpop.permute.xlu1 %2078 }
 0x6ae   : > { %2841 = vst.msk [vmem:[%s4692_s16 + $0xc4] sm:$0xf] %vm1723_vm2, %v2079_v52  ;;  %v2206_v44 = vpop.permute.xlu0 %2205 }
 0x6af   : > { %2872 = vst.msk [vmem:[%s4701_s14 + $0xc0] sm:$0xf] %vm1723_vm2, %v2206_v44 }
 0x6b1   : > { %v2208_v24 = vpop.permute.xlu1 %2207 }
 0x6b2   : > { %2873 = vst.msk [vmem:[%s4701_s14 + $0xc4] sm:$0xf] %vm1723_vm2, %v2208_v24  ;;  %v2081_v34 = vpop.permute.xlu0 %2080 }
 0x6b3   : > { %2842 = vst.msk [vmem:[%s4692_s16 + $0xc8] sm:$0xf] %vm1723_vm2, %v2081_v34 }
 0x6b5   : > { %v2083_v48 = vpop.permute.xlu1 %2082 }
 0x6b6   : > { %2843 = vst.msk [vmem:[%s4692_s16 + $0xcc] sm:$0xf] %vm1723_vm2, %v2083_v48  ;;  %v2210_v36 = vpop.permute.xlu0 %2209 }
 0x6b7   : > { %2874 = vst.msk [vmem:[%s4701_s14 + $0xc8] sm:$0xf] %vm1723_vm2, %v2210_v36 }
 0x6b9   : > { %v2212_v0 = vpop.permute.xlu1 %2211 }
 0x6ba   : > { %2875 = vst.msk [vmem:[%s4701_s14 + $0xcc] sm:$0xf] %vm1723_vm2, %v2212_v0  ;;  %v2085_v14 = vpop.permute.xlu0 %2084 }
 0x6bb   : > { %2844 = vst.msk [vmem:[%s4692_s16 + $0xd0] sm:$0xf] %vm1723_vm2, %v2085_v14 }
 0x6bd   : > { %v2087_v40 = vpop.permute.xlu1 %2086 }
 0x6be   : > { %2845 = vst.msk [vmem:[%s4692_s16 + $0xd4] sm:$0xf] %vm1723_vm2, %v2087_v40  ;;  %v2214_v19 = vpop.permute.xlu0 %2213 }
 0x6bf   : > { %2876 = vst.msk [vmem:[%s4701_s14 + $0xd0] sm:$0xf] %vm1723_vm2, %v2214_v19 }
 0x6c1   : > { %v2216_v10 = vpop.permute.xlu1 %2215 }
 0x6c2   : > { %2877 = vst.msk [vmem:[%s4701_s14 + $0xd4] sm:$0xf] %vm1723_vm2, %v2216_v10  ;;  %v2089_v25 = vpop.permute.xlu0 %2088 }
 0x6c3   : > { %2846 = vst.msk [vmem:[%s4692_s16 + $0xd8] sm:$0xf] %vm1723_vm2, %v2089_v25 }
 0x6c5   : > { %v2091_v3 = vpop.permute.xlu1 %2090 }
 0x6c6   : > { %2847 = vst.msk [vmem:[%s4692_s16 + $0xdc] sm:$0xf] %vm1723_vm2, %v2091_v3  ;;  %v2218_v28 = vpop.permute.xlu0 %2217 }
 0x6c7   : > { %2878 = vst.msk [vmem:[%s4701_s14 + $0xd8] sm:$0xf] %vm1723_vm2, %v2218_v28 }
 0x6c9   : > { %v2220_v26 = vpop.permute.xlu1 %2219 }
 0x6ca   : > { %2879 = vst.msk [vmem:[%s4701_s14 + $0xdc] sm:$0xf] %vm1723_vm2, %v2220_v26  ;;  %v2093_v8 = vpop.permute.xlu0 %2092 }
 0x6cb   : > { %2848 = vst.msk [vmem:[%s4692_s16 + $0xe0] sm:$0xf] %vm1723_vm2, %v2093_v8 }
 0x6cd   : > { %v2095_v50 = vpop.permute.xlu1 %2094 }
 0x6ce   : > { %2849 = vst.msk [vmem:[%s4692_s16 + $0xe4] sm:$0xf] %vm1723_vm2, %v2095_v50  ;;  %v2222_v9 = vpop.permute.xlu0 %2221 }
 0x6cf   : > { %2880 = vst.msk [vmem:[%s4701_s14 + $0xe0] sm:$0xf] %vm1723_vm2, %v2222_v9 }
 0x6d1   : > { %v2224_v20 = vpop.permute.xlu1 %2223 }
 0x6d2   : > { %2881 = vst.msk [vmem:[%s4701_s14 + $0xe4] sm:$0xf] %vm1723_vm2, %v2224_v20  ;;  %v2097_v54 = vpop.permute.xlu0 %2096 }
 0x6d3   : > { %2850 = vst.msk [vmem:[%s4692_s16 + $0xe8] sm:$0xf] %vm1723_vm2, %v2097_v54 }
 0x6d5   : > { %v2099_v49 = vpop.permute.xlu1 %2098 }
 0x6d6   : > { %2851 = vst.msk [vmem:[%s4692_s16 + $0xec] sm:$0xf] %vm1723_vm2, %v2099_v49  ;;  %v2226_v15 = vpop.permute.xlu0 %2225 }
 0x6d7   : > { %2882 = vst.msk [vmem:[%s4701_s14 + $0xe8] sm:$0xf] %vm1723_vm2, %v2226_v15 }
 0x6d9   : > { %v2228_v53 = vpop.permute.xlu1 %2227 }
 0x6da   : > { %2883 = vst.msk [vmem:[%s4701_s14 + $0xec] sm:$0xf] %vm1723_vm2, %v2228_v53  ;;  %v2101_v33 = vpop.permute.xlu0 %2100 }
 0x6db   : > { %2852 = vst.msk [vmem:[%s4692_s16 + $0xf0] sm:$0xf] %vm1723_vm2, %v2101_v33 }
 0x6dd   : > { %v2103_v12 = vpop.permute.xlu1 %2102 }
 0x6de   : > { %2853 = vst.msk [vmem:[%s4692_s16 + $0xf4] sm:$0xf] %vm1723_vm2, %v2103_v12  ;;  %v2230_v32 = vpop.permute.xlu0 %2229 }
 0x6df   : > { %2884 = vst.msk [vmem:[%s4701_s14 + $0xf0] sm:$0xf] %vm1723_vm2, %v2230_v32 }
 0x6e1   : > { %v2232_v61 = vpop.permute.xlu1 %2231 }
 0x6e2   : > { %2885 = vst.msk [vmem:[%s4701_s14 + $0xf4] sm:$0xf] %vm1723_vm2, %v2232_v61  ;;  %v2105_v31 = vpop.permute.xlu0 %2104 }
 0x6e3   : > { %2854 = vst.msk [vmem:[%s4692_s16 + $0xf8] sm:$0xf] %vm1723_vm2, %v2105_v31 }
 0x6e5   : > { %v2107_v7 = vpop.permute.xlu1 %2106 }
 0x6e6   : > { %2855 = vst.msk [vmem:[%s4692_s16 + $0xfc] sm:$0xf] %vm1723_vm2, %v2107_v7  ;;  %v2234_v21 = vpop.permute.xlu0 %2233 }
 0x6e7   : > { %2886 = vst.msk [vmem:[%s4701_s14 + $0xf8] sm:$0xf] %vm1723_vm2, %v2234_v21 }
 0x6e8   : > { %3671 = shalt.err (!%p3668_p8)
}
 0x6e9   : > { %s3672_s16 = scalar_lea.hbm %s5612_s25, 4096  ;;  %s3676_s18 = scalar_lea.hbm %s5756_s7, 8192 }
 0x6ea   : > { %p3673_p10 = scmp.ne.s32.totalorder %s5612_s25, %s3672_s16  ;;  %p3677_p0 = scmp.lt.u32.totalorder %s5612_s25, %s5756_s7 }
 0x6eb   : > { %p3678_p5 = scmp.lt.u32.totalorder %s3676_s18, %s3672_s16  ;;  %p3680_p6 = scmp.lt.u32.totalorder %s3672_s16, %s5612_s25 }
 0x6ec   : > { %p3674_p11 = pnand %p3673_p10, %p5791_p9 }
 0x6ed   : > { %p3679_p7 = por %p3678_p5, %p3677_p0 }
 0x6ee   : > { %p3675_p12 = pneg %p3674_p11 }
 0x6ef   : > { %p3681_p4 = por %p3680_p6, %p3679_p7 }
 0x6f1   : > { %p3682_p13 = pnand %p3681_p4, %p3675_p12 }
 0x6f3   : > { %3685 = shalt.err (!%p3682_p13)
}
 0x6f4   : > { %s3815_s22 = smov 4   ;;  %s5792_s24 = scalar_lea.sflag [#allocation4], %s4135_s13  ;;  %v2236_v60 = vpop.permute.xlu1 %2235  ;;  %v2363_v6 = vpop.permute.xlu0 %2362 }
 0x6f5   : > { %3325 = dma.vmem_to_hbm [thread:$0]  (%p5791_p9), %s5614_s29, 4096, %s5612_s25, %s5792_s24, %s3813_s28, %s3813_s28, %s3815_s22  }
 0x6f6   : > { %s5652_s3 = scalar_lea.hbm %s5757_s8, %s5600_s1  ;;  %s5793_s16 = sshll.u32 %s4701_s14, 4  ;;  %2887 = vst.msk [vmem:[%s4701_s14 + $0xfc] sm:$0xf] %vm1723_vm2, %v2236_v60  ;;  %2918 = vst.msk [vmem:[%s4706_s19 + $0xf8] sm:$0xf] %vm1723_vm2, %v2363_v6  ;;  %s5656_s16 = int_to_ptr.vmem [resolvable:$true] %s5793_s16 }
 0x6f7   : > { %s2487_s13 = sshll.u32 %s4706_s19, 4  ;;  %s5794_s18 = sand.u32 1, %s3889_s15   ;;  %s5700_s13 = int_to_ptr.vmem [resolvable:$true] %s2487_s13 }
 0x6f8   : > { %s5665_s29 = scalar_lea.sflag [#allocation16], %s5794_s18  ;;  %s3686_s25 = scalar_lea.vmem %s5656_s16, 4096 }
 0x6f9   : > { %p3687_p1 = scmp.ne.s32.totalorder %s5656_s16, %s3686_s25  ;;  %s3816_s9 = smov [#allocation15]  }
 0x6fa   : > { %s3690_s24 = sshll.u32 %s3816_s9, 4  ;;  %s3691_s24 = int_to_ptr.vmem [resolvable:$false] %s3690_s24 }
 0x6fb   : > { %p3688_p3 = pnand %p3687_p1, %p5791_p9  ;;  %s3692_s21 = scalar_lea.vmem %s3691_s24, 8192 }
 0x6fc   : > { %p3693_p8 = scmp.lt.s32.totalorder %s5656_s16, %s3691_s24  ;;  %p3694_p10 = scmp.lt.s32.totalorder %s3692_s21, %s3686_s25 }
 0x6fd   : > { %p3689_p2 = pneg %p3688_p3 }
 0x6fe   : > { %p3695_p11 = por %p3694_p10, %p3693_p8 }
 0x700   : > { %p3696_p12 = pnand %p3695_p11, %p3689_p2 }
 0x702   : > { %3699 = shalt.err (!%p3696_p12)
}
 0x703   : > { %s3700_s15 = scalar_lea.hbm %s5652_s3, 4096  ;;  %s3704_s18 = scalar_lea.hbm %s5757_s8, 8192 }
 0x704   : > { %p3701_p0 = scmp.ne.s32.totalorder %s5652_s3, %s3700_s15  ;;  %p3705_p6 = scmp.lt.u32.totalorder %s5652_s3, %s5757_s8 }
 0x705   : > { %p3706_p4 = scmp.lt.u32.totalorder %s3704_s18, %s3700_s15  ;;  %p3708_p1 = scmp.lt.u32.totalorder %s3700_s15, %s5652_s3 }
 0x706   : > { %p3702_p5 = pnand %p3701_p0, %p5791_p9 }
 0x707   : > { %p3707_p13 = por %p3706_p4, %p3705_p6 }
 0x708   : > { %p3703_p7 = pneg %p3702_p5 }
 0x709   : > { %p3709_p3 = por %p3708_p1, %p3707_p13 }
 0x70b   : > { %p3710_p2 = pnand %p3709_p3, %p3703_p7 }
 0x70d   : > { %3713 = shalt.err (!%p3710_p2)
}
 0x70e   : > { %3326 = dma.vmem_to_hbm [thread:$0]  (%p5791_p9), %s5656_s16, 4096, %s5652_s3, %s5665_s29, %s3813_s28, %s3813_s28, %s3815_s22   ;;  %v2365_v57 = vpop.permute.xlu1 %2364 }
 0x70f   : > { %s5795_s14 = sld [smem:[#allocation26_spill]]  ;;  %2919 = vst.msk [vmem:[%s4706_s19 + $0xfc] sm:$0xf] %vm1723_vm2, %v2365_v57  ;;  %s3714_s26 = scalar_lea.vmem %s5700_s13, 4096 }
 0x710   : > { %p3715_p8 = scmp.ne.s32.totalorder %s5700_s13, %s3714_s26  ;;  %s3817_s3 = smov [#allocation17]  }
 0x711   : > { %s3718_s16 = sshll.u32 %s3817_s3, 4  ;;  %s3719_s16 = int_to_ptr.vmem [resolvable:$false] %s3718_s16 }
 0x712   : > { %p3716_p10 = pnand %p3715_p8, %p5791_p9  ;;  %s3720_s18 = scalar_lea.vmem %s3719_s16, 8192 }
 0x713   : > { %p3721_p12 = scmp.lt.s32.totalorder %s5700_s13, %s3719_s16  ;;  %p3722_p0 = scmp.lt.s32.totalorder %s3720_s18, %s3714_s26 }
 0x714   : > { %p3717_p11 = pneg %p3716_p10 }
 0x715   : > { %s5696_s15 = scalar_lea.hbm %s5795_s14, %s5600_s1  ;;  %p3723_p5 = por %p3722_p0, %p3721_p12 }
 0x717   : > { %p3724_p7 = pnand %p3723_p5, %p3717_p11 }
 0x719   : > { %3727 = shalt.err (!%p3724_p7)
}
 0x71a   : > { %s3728_s19 = scalar_lea.hbm %s5696_s15, 4096  ;;  %s3732_s24 = scalar_lea.hbm %s5795_s14, 8192 }
 0x71b   : > { %p3729_p6 = scmp.ne.s32.totalorder %s5696_s15, %s3728_s19  ;;  %p3733_p1 = scmp.lt.u32.totalorder %s5696_s15, %s5795_s14 }
 0x71c   : > { %p3734_p3 = scmp.lt.u32.totalorder %s3732_s24, %s3728_s19  ;;  %p3736_p8 = scmp.lt.u32.totalorder %s3728_s19, %s5696_s15 }
 0x71d   : > { %p3730_p4 = pnand %p3729_p6, %p5791_p9 }
 0x71e   : > { %p3735_p2 = por %p3734_p3, %p3733_p1 }
 0x71f   : > { %p3731_p13 = pneg %p3730_p4 }
 0x720   : > { %p3737_p10 = por %p3736_p8, %p3735_p2 }
 0x722   : > { %p3738_p11 = pnand %p3737_p10, %p3731_p13 }
 0x724   : > { %3741 = shalt.err (!%p3738_p11)
}
 0x725   : > { %3327 = dma.vmem_to_hbm [thread:$0]  (%p5791_p9), %s5700_s13, 4096, %s5696_s15, %s5665_s29, %s3813_s28, %s3813_s28, %s3815_s22  }
 0x726 PF: > { %s2502_s26 = sand.u32 1, %s3784_s30   ;;  %p5796_p12 = scmp.ne.s32.totalorder %s5782_s23, 0 }
 0x727   : > { %p5797_p0 = scmp.ge.s32.totalorder %s3796_s12, 2  ;;  %s2503_s3 = scalar_lea.sflag [#allocation4], %s2502_s26 }
 0x729   : > { %p3355_p5 = pnand %p5797_p0, %p5796_p12 }
 0x72b   : > { %3775 = dma.done.wait (!%p3355_p5), %s2503_s3, 4096  }
 0x72c   : > { %3777 = vsyncadd (!%p3355_p5), %s2503_s3, 4294963200  ;;  %s5798_s17 = sadd.s32 4294967294, %s3796_s12  }
 0x72d   : > { %s2511_s16 = sand.u32 1, %s5798_s17  }
 0x72e   : > { %s2512_s18 = scalar_lea.sflag [#allocation16], %s2511_s16 }
 0x72f   : > { %3779 = dma.done.wait (!%p3355_p5), %s2512_s18, 8192  }
 0x730   : > { %3781 = vsyncadd (!%p3355_p5), %s2512_s18, 4294959104  ;;  %p29_p9 = scmp.ge.s32.totalorder %s4051_s27, 4   ;;  %s5799_s30 = smov %s3788_s10 }
 0x731   : > { %s5800_s10 = smov %s3792_s11  ;;  %s5801_s11 = smov %s4062_s20 }
 0x732   : > { %s5802_s12 = smov %s4051_s27  ;;  %31 = sbr.rel (!%p29_p9) target bundleno = 14 (0xe), region = 152 }
 0x739   :  { %2526 = vsyncpa [#allocation3], 1 }
 0x73a   :  { %2528 = vsyncpa [#allocation3 + $0x1], 1 }
 0x73b   :  { %2529 = vsyncpa [#allocation6], 1 }
 0x73c   :  { %2530 = vsyncpa [#allocation9], 1 }
 0x73d   :  { %2531 = vsyncpa [#allocation12], 1 }
 0x73e   :  { %2532 = vsyncpa [#allocation4], 1 }
 0x73f   :  { %2534 = vsyncpa [#allocation4 + $0x1], 1 }
 0x740   :  { %2535 = vsyncpa [#allocation16], 1 }
 0x741   :  { %2537 = vsyncpa [#allocation16 + $0x1], 1 }

</bundles_post_ra>
